<compile_context>
chip_gen: v7x
topology: tpu7x:2x2x1
jax: 0.10.0
libtpu: 0.0.40
codegen_flags: <defaults>
</compile_context>

<pallas_src>
import functools

import jax
import jax.numpy as jnp
from jax.experimental import pallas as pl
from jax.experimental.pallas import tpu as pltpu


# ----------------------------- fused kernel ----------------------------------


def encoder_layer_kernel(x_ref, wq_ref, bq_ref, wk_ref, bk_ref, wv_ref, bv_ref,
                         wo_ref, bo_ref, g1_ref, be1_ref,
                         w1_ref, b1_ref, w2_ref, b2_ref, g2_ref, be2_ref,
                         o_ref, *, batch, seq, heads, eps):
    """Full encoder layer on the flattened (B*S, D) rows: MHA -> add&LN -> FFN -> add&LN."""
    R, D = x_ref.shape                       # R = batch * seq
    x = x_ref[...]                           # (R, D) f32
    xb = x.astype(jnp.bfloat16)              # MXU operand dtype

    # ---- multi-head attention with head-major weights ------------------------
    # wq/wk/wv: (heads, D, d_k)  -> per-head weight is a free leading-dim index.
    # wo:       (heads, d_k, D)  -> output projection accumulated per head.
    acc = jnp.zeros((R, D), jnp.float32)
    # TODO(synk): use lax.fori_loop(..., unroll=True) once `heads` grows.
    for hd in range(heads):
        # Per-head projections (scale 1/sqrt(d_k) already folded into wq/bq).
        q = jnp.dot(xb, wq_ref[hd], preferred_element_type=jnp.float32) + bq_ref[hd]
        k = jnp.dot(xb, wk_ref[hd], preferred_element_type=jnp.float32) + bk_ref[hd]
        v = jnp.dot(xb, wv_ref[hd], preferred_element_type=jnp.float32) + bv_ref[hd]

        # Attention is independent per batch element: slice f32 rows at vreg
        # aligned (multiple-of-8) offsets, cast to bf16 after slicing.
        outs = []
        for b in range(batch):
            lo = b * seq
            qb = q[lo:lo + seq, :].astype(jnp.bfloat16)   # (S, d_k)
            kb = k[lo:lo + seq, :].astype(jnp.bfloat16)
            vb = v[lo:lo + seq, :].astype(jnp.bfloat16)
            # scores: contract over d_k without an explicit transpose.
            scores = jax.lax.dot_general(qb, kb, (((1,), (1,)), ((), ())),
                                         preferred_element_type=jnp.float32)  # (S, S)
            m = jnp.max(scores, axis=-1, keepdims=True)
            e = jnp.exp(scores - m)
            denom = jnp.sum(e, axis=-1, keepdims=True)
            p = e * pl.reciprocal(denom, approx=True)      # EUP slot
            outs.append(jnp.dot(p.astype(jnp.bfloat16), vb,
                                preferred_element_type=jnp.float32))           # (S, d_k)
        oh = jnp.concatenate(outs, axis=0)                 # (R, d_k) f32, aligned concat
        # Fold this head's slice of the output projection (no head concat needed).
        acc = acc + jnp.dot(oh.astype(jnp.bfloat16), wo_ref[hd],
                            preferred_element_type=jnp.float32)
    attn = acc + bo_ref[...]

    # ---- residual + LayerNorm 1 (f32 elementwise) ----------------------------
    y1 = x + attn
    mu1 = jnp.mean(y1, axis=-1, keepdims=True)
    var1 = jnp.mean((y1 - mu1) ** 2, axis=-1, keepdims=True)
    sub1 = (y1 - mu1) * jax.lax.rsqrt(var1 + eps) * g1_ref[...] + be1_ref[...]

    # ---- position-wise FFN: relu(sub1 W1 + b1) W2 + b2 -----------------------
    h1 = jnp.dot(sub1.astype(jnp.bfloat16), w1_ref[...],
                 preferred_element_type=jnp.float32) + b1_ref[...]
    h1 = jnp.maximum(h1, 0.0)
    ffn = jnp.dot(h1.astype(jnp.bfloat16), w2_ref[...],
                  preferred_element_type=jnp.float32) + b2_ref[...]

    # ---- residual + LayerNorm 2 ----------------------------------------------
    y2 = sub1 + ffn
    mu2 = jnp.mean(y2, axis=-1, keepdims=True)
    var2 = jnp.mean((y2 - mu2) ** 2, axis=-1, keepdims=True)
    out = (y2 - mu2) * jax.lax.rsqrt(var2 + eps) * g2_ref[...] + be2_ref[...]

    # Output is < one (8,128) tile of payload per row-group: stores are masked
    # regardless of layout, so we emit the natural (R, D) slab and reshape in
    # the wrapper. At real sizes (D >= 128) this slab is already lane-dense.
    o_ref[...] = out


# ----------------------------- parameter prep (hoisted, call once) ------------


def prepare_encoder_params(params, *, h):
    """One-time repacking: head-major weights, folded softmax scale, bf16 casts."""
    mha = params["mha"]
    ffn = params["ffn"]
    D = mha["wq"].shape[0]
    assert D % h == 0
    d_k = D // h
    scale = 1.0 / (d_k ** 0.5)

    def head_major_w(w):     # (D, D) -> (h, D, d_k), heads on the leading axis
        return jnp.transpose(w.reshape(D, h, d_k), (1, 0, 2))

    def head_major_b(b):     # (1, D) -> (h, 1, d_k)
        return jnp.transpose(b.reshape(1, h, d_k), (1, 0, 2))

    return dict(
        wq=head_major_w(mha["wq"] * scale).astype(jnp.bfloat16),
        bq=head_major_b(mha["bq"] * scale),
        wk=head_major_w(mha["wk"]).astype(jnp.bfloat16),
        bk=head_major_b(mha["bk"]),
        wv=head_major_w(mha["wv"]).astype(jnp.bfloat16),
        bv=head_major_b(mha["bv"]),
        wo=mha["wo"].reshape(h, d_k, D).astype(jnp.bfloat16),
        bo=mha["bo"],
        g1=params["ln1_gamma"], be1=params["ln1_beta"],
        w1=ffn["w1"].astype(jnp.bfloat16), b1=ffn["b1"],
        w2=ffn["w2"].astype(jnp.bfloat16), b2=ffn["b2"],
        g2=params["ln2_gamma"], be2=params["ln2_beta"],
        h=h, d_k=d_k,
    )


# ----------------------------- wrapper ----------------------------------------


def encoder_layer_forward(x, pp, *, eps):
    B, S, D = x.shape
    h, d_k = pp["h"], pp["d_k"]
    d_ff = pp["w1"].shape[1]
    R = B * S
    x2 = x.reshape(R, D)                     # free metadata reshape in XLA

    operands = (x2, pp["wq"], pp["bq"], pp["wk"], pp["bk"], pp["wv"], pp["bv"],
                pp["wo"], pp["bo"], pp["g1"], pp["be1"],
                pp["w1"], pp["b1"], pp["w2"], pp["b2"], pp["g2"], pp["be2"])

    def full_spec(shape):                    # one block = whole array, one grid step
        n = len(shape)
        return pl.BlockSpec(shape, lambda i, _n=n: (0,) * _n)

    flops = (2 * R * D * d_k * 3 * h                 # q/k/v projections
             + 2 * B * h * S * S * d_k * 2           # scores + attend
             + 2 * R * d_k * D * h                   # output projection
             + 2 * R * D * d_ff * 2)                 # FFN
    transcendentals = B * h * S * S + B * h * S + 2 * R
    bytes_accessed = sum(int(o.size) * o.dtype.itemsize for o in operands) + R * D * 4
    cost = pl.CostEstimate(flops=int(flops),
                           transcendentals=int(transcendentals),
                           bytes_accessed=int(bytes_accessed))

    kern = functools.partial(encoder_layer_kernel,
                             batch=B, seq=S, heads=h, eps=eps)

    out_flat = pl.pallas_call(
        kern,
        out_shape=jax.ShapeDtypeStruct((R, D), jnp.float32),
        grid=(1,),                                    # single step: launch-bound at toy shapes
        in_specs=[full_spec(o.shape) for o in operands],
        out_specs=full_spec((R, D)),
        compiler_params=pltpu.CompilerParams(
            dimension_semantics=("arbitrary",)),
        cost_estimate=cost,
    )(*operands)
    return out_flat.reshape(B, S, D)


# ----------------------------- reference (pure JAX) ---------------------------
# Matches the kernel's numerics: bf16 matmul operands, f32 accumulation,
# f32 elementwise / softmax / LayerNorm.


def encoder_layer_reference(x, params, *, h, eps):
    B, S, D = x.shape
    d_k = D // h
    bf = jnp.bfloat16

    def mm(a, w):
        return jnp.dot(a.astype(bf), w.astype(bf), preferred_element_type=jnp.float32)

    p = params["mha"]
    q = mm(x, p["wq"]) + p["bq"]
    k = mm(x, p["wk"]) + p["bk"]
    v = mm(x, p["wv"]) + p["bv"]

    def split(t):  # (B, S, D) -> (B, h, S, d_k)
        return t.reshape(B, S, h, d_k).transpose(0, 2, 1, 3)

    qh, kh, vh = split(q), split(k), split(v)
    s = jnp.einsum("bhqd,bhkd->bhqk", qh.astype(bf), kh.astype(bf),
                   preferred_element_type=jnp.float32) / (d_k ** 0.5)
    a = jax.nn.softmax(s, axis=-1)
    o = jnp.einsum("bhqk,bhkd->bhqd", a.astype(bf), vh.astype(bf),
                   preferred_element_type=jnp.float32)
    o = o.transpose(0, 2, 1, 3).reshape(B, S, D)
    attn = mm(o, p["wo"]) + p["bo"]

    def ln(y, g, b):
        mu = jnp.mean(y, axis=-1, keepdims=True)
        var = jnp.mean((y - mu) ** 2, axis=-1, keepdims=True)
        return (y - mu) / jnp.sqrt(var + eps) * g + b

    sub1 = ln(x + attn, params["ln1_gamma"], params["ln1_beta"])
    f = params["ffn"]
    h1 = jnp.maximum(mm(sub1, f["w1"]) + f["b1"], 0.0)
    ff = mm(h1, f["w2"]) + f["b2"]
    return ln(sub1 + ff, params["ln2_gamma"], params["ln2_beta"])


# ----------------------------- main -------------------------------------------


if __name__ == "__main__":
    # Small shapes consistent with the module's forward.
    B, S, D, H, D_FF = 2, 8, 32, 4, 64
    EPS = 0.1

    key = jax.random.PRNGKey(0)
    keys = jax.random.split(key, 12)

    def init(k, shape, scale=0.02):
        return (scale * jax.random.normal(k, shape)).astype(jnp.float32)

    params = {
        "mha": {
            "wq": init(keys[0], (D, D)), "bq": init(keys[1], (1, D)),
            "wk": init(keys[2], (D, D)), "bk": init(keys[3], (1, D)),
            "wv": init(keys[4], (D, D)), "bv": init(keys[5], (1, D)),
            "wo": init(keys[6], (D, D)), "bo": init(keys[7], (1, D)),
        },
        "ffn": {
            "w1": init(keys[8], (D, D_FF)), "b1": init(keys[9], (1, D_FF)),
            "w2": init(keys[10], (D_FF, D)), "b2": init(keys[11], (1, D)),
        },
        "ln1_gamma": jnp.ones((1, D), jnp.float32),
        "ln1_beta": jnp.zeros((1, D), jnp.float32),
        "ln2_gamma": jnp.ones((1, D), jnp.float32),
        "ln2_beta": jnp.zeros((1, D), jnp.float32),
    }

    x = jax.random.normal(jax.random.PRNGKey(42), (B, S, D), jnp.float32)

    # Weight repacking / casting hoisted out of the forward path (done once).
    prepped = prepare_encoder_params(params, h=H)

    out = encoder_layer_forward(x, prepped, eps=EPS)
    out = jax.block_until_ready(out)

    ref = encoder_layer_reference(x, params, h=H, eps=EPS)
    assert out.shape == (B, S, D)
    # bf16 matmul operands + approx reciprocal + folded softmax scale -> compare
    # against the matched bf16 reference with a correspondingly relaxed tolerance.
    assert jnp.allclose(out, ref, atol=1e-2, rtol=1e-2), "mismatch vs JAX reference"

    print("KERNEL_OK")
</pallas_src>

<mosaic_0001>
module attributes {stable_mosaic.version = 11 : i64} {
  func.func @encoder_layer_kernel(%arg0: i32, %arg1: memref<16x32xf32, #tpu.memory_space<vmem>>, %arg2: memref<4x32x8xbf16, #tpu.memory_space<vmem>>, %arg3: memref<4x1x8xf32, #tpu.memory_space<vmem>>, %arg4: memref<4x32x8xbf16, #tpu.memory_space<vmem>>, %arg5: memref<4x1x8xf32, #tpu.memory_space<vmem>>, %arg6: memref<4x32x8xbf16, #tpu.memory_space<vmem>>, %arg7: memref<4x1x8xf32, #tpu.memory_space<vmem>>, %arg8: memref<4x8x32xbf16, #tpu.memory_space<vmem>>, %arg9: memref<1x32xf32, #tpu.memory_space<vmem>>, %arg10: memref<1x32xf32, #tpu.memory_space<vmem>>, %arg11: memref<1x32xf32, #tpu.memory_space<vmem>>, %arg12: memref<32x64xbf16, #tpu.memory_space<vmem>>, %arg13: memref<1x64xf32, #tpu.memory_space<vmem>>, %arg14: memref<64x32xbf16, #tpu.memory_space<vmem>>, %arg15: memref<1x32xf32, #tpu.memory_space<vmem>>, %arg16: memref<1x32xf32, #tpu.memory_space<vmem>>, %arg17: memref<1x32xf32, #tpu.memory_space<vmem>>, %arg18: memref<16x32xf32, #tpu.memory_space<vmem>>) attributes {dimension_semantics = [#tpu.dimension_semantics<arbitrary>], iteration_bounds = array<i64: 1>, scalar_prefetch = 0 : i64, scratch_operands = 0 : i64, tpu.core_type = #tpu.core_type<tc>, window_params = [{pipeline_mode = #tpu.pipeline_mode<synchronous>, transform_indices = @transform_0, window_bounds = array<i64: 16, 32>}, {pipeline_mode = #tpu.pipeline_mode<synchronous>, transform_indices = @transform_1, window_bounds = array<i64: 4, 32, 8>}, {pipeline_mode = #tpu.pipeline_mode<synchronous>, transform_indices = @transform_2, window_bounds = array<i64: 4, 1, 8>}, {pipeline_mode = #tpu.pipeline_mode<synchronous>, transform_indices = @transform_3, window_bounds = array<i64: 4, 32, 8>}, {pipeline_mode = #tpu.pipeline_mode<synchronous>, transform_indices = @transform_4, window_bounds = array<i64: 4, 1, 8>}, {pipeline_mode = #tpu.pipeline_mode<synchronous>, transform_indices = @transform_5, window_bounds = array<i64: 4, 32, 8>}, {pipeline_mode = #tpu.pipeline_mode<synchronous>, transform_indices = @transform_6, window_bounds = array<i64: 4, 1, 8>}, {pipeline_mode = #tpu.pipeline_mode<synchronous>, transform_indices = @transform_7, window_bounds = array<i64: 4, 8, 32>}, {pipeline_mode = #tpu.pipeline_mode<synchronous>, transform_indices = @transform_8, window_bounds = array<i64: 1, 32>}, {pipeline_mode = #tpu.pipeline_mode<synchronous>, transform_indices = @transform_9, window_bounds = array<i64: 1, 32>}, {pipeline_mode = #tpu.pipeline_mode<synchronous>, transform_indices = @transform_10, window_bounds = array<i64: 1, 32>}, {pipeline_mode = #tpu.pipeline_mode<synchronous>, transform_indices = @transform_11, window_bounds = array<i64: 32, 64>}, {pipeline_mode = #tpu.pipeline_mode<synchronous>, transform_indices = @transform_12, window_bounds = array<i64: 1, 64>}, {pipeline_mode = #tpu.pipeline_mode<synchronous>, transform_indices = @transform_13, window_bounds = array<i64: 64, 32>}, {pipeline_mode = #tpu.pipeline_mode<synchronous>, transform_indices = @transform_14, window_bounds = array<i64: 1, 32>}, {pipeline_mode = #tpu.pipeline_mode<synchronous>, transform_indices = @transform_15, window_bounds = array<i64: 1, 32>}, {pipeline_mode = #tpu.pipeline_mode<synchronous>, transform_indices = @transform_16, window_bounds = array<i64: 1, 32>}, {pipeline_mode = #tpu.pipeline_mode<synchronous>, transform_indices = @transform_17, window_bounds = array<i64: 16, 32>}]} {
    %c0 = arith.constant 0 : index
    %c0_0 = arith.constant 0 : index
    %0 = vector.load %arg1[%c0, %c0_0] : memref<16x32xf32, #tpu.memory_space<vmem>>, vector<16x32xf32>
    %1 = arith.truncf %0 : vector<16x32xf32> to vector<16x32xbf16>
    %cst = arith.constant 0.000000e+00 : f32
    %2 = vector.broadcast %cst : f32 to vector<16x32xf32>
    %c0_1 = arith.constant 0 : index
    %c0_2 = arith.constant 0 : index
    %c0_3 = arith.constant 0 : index
    %3 = vector.load %arg2[%c0_1, %c0_2, %c0_3] : memref<4x32x8xbf16, #tpu.memory_space<vmem>>, vector<1x32x8xbf16>
    %4 = vector.shape_cast %3 : vector<1x32x8xbf16> to vector<32x8xbf16>
    %cst_4 = arith.constant dense<0.000000e+00> : vector<16x8xf32>
    %5 = tpu.matmul %1, %4, %cst_4 {dimension_numbers = #tpu.dot_dimension_numbers<[1], [0], [0], [1], [0, 0, 1, 1], [], []>} : vector<16x32xbf16>, vector<32x8xbf16>, vector<16x8xf32> -> vector<16x8xf32>
    %c0_5 = arith.constant 0 : index
    %c0_6 = arith.constant 0 : index
    %c0_7 = arith.constant 0 : index
    %6 = vector.load %arg3[%c0_5, %c0_6, %c0_7] : memref<4x1x8xf32, #tpu.memory_space<vmem>>, vector<1x1x8xf32>
    %7 = vector.shape_cast %6 : vector<1x1x8xf32> to vector<1x8xf32>
    %8 = vector.broadcast %7 : vector<1x8xf32> to vector<16x8xf32>
    %9 = arith.addf %5, %8 : vector<16x8xf32>
    %c0_8 = arith.constant 0 : index
    %c0_9 = arith.constant 0 : index
    %c0_10 = arith.constant 0 : index
    %10 = vector.load %arg4[%c0_8, %c0_9, %c0_10] : memref<4x32x8xbf16, #tpu.memory_space<vmem>>, vector<1x32x8xbf16>
    %11 = vector.shape_cast %10 : vector<1x32x8xbf16> to vector<32x8xbf16>
    %cst_11 = arith.constant dense<0.000000e+00> : vector<16x8xf32>
    %12 = tpu.matmul %1, %11, %cst_11 {dimension_numbers = #tpu.dot_dimension_numbers<[1], [0], [0], [1], [0, 0, 1, 1], [], []>} : vector<16x32xbf16>, vector<32x8xbf16>, vector<16x8xf32> -> vector<16x8xf32>
    %c0_12 = arith.constant 0 : index
    %c0_13 = arith.constant 0 : index
    %c0_14 = arith.constant 0 : index
    %13 = vector.load %arg5[%c0_12, %c0_13, %c0_14] : memref<4x1x8xf32, #tpu.memory_space<vmem>>, vector<1x1x8xf32>
    %14 = vector.shape_cast %13 : vector<1x1x8xf32> to vector<1x8xf32>
    %15 = vector.broadcast %14 : vector<1x8xf32> to vector<16x8xf32>
    %16 = arith.addf %12, %15 : vector<16x8xf32>
    %c0_15 = arith.constant 0 : index
    %c0_16 = arith.constant 0 : index
    %c0_17 = arith.constant 0 : index
    %17 = vector.load %arg6[%c0_15, %c0_16, %c0_17] : memref<4x32x8xbf16, #tpu.memory_space<vmem>>, vector<1x32x8xbf16>
    %18 = vector.shape_cast %17 : vector<1x32x8xbf16> to vector<32x8xbf16>
    %cst_18 = arith.constant dense<0.000000e+00> : vector<16x8xf32>
    %19 = tpu.matmul %1, %18, %cst_18 {dimension_numbers = #tpu.dot_dimension_numbers<[1], [0], [0], [1], [0, 0, 1, 1], [], []>} : vector<16x32xbf16>, vector<32x8xbf16>, vector<16x8xf32> -> vector<16x8xf32>
    %c0_19 = arith.constant 0 : index
    %c0_20 = arith.constant 0 : index
    %c0_21 = arith.constant 0 : index
    %20 = vector.load %arg7[%c0_19, %c0_20, %c0_21] : memref<4x1x8xf32, #tpu.memory_space<vmem>>, vector<1x1x8xf32>
    %21 = vector.shape_cast %20 : vector<1x1x8xf32> to vector<1x8xf32>
    %22 = vector.broadcast %21 : vector<1x8xf32> to vector<16x8xf32>
    %23 = arith.addf %19, %22 : vector<16x8xf32>
    %24 = vector.extract_strided_slice %9 {offsets = [0, 0], sizes = [8, 8], strides = [1, 1]} : vector<16x8xf32> to vector<8x8xf32>
    %25 = arith.truncf %24 : vector<8x8xf32> to vector<8x8xbf16>
    %26 = vector.extract_strided_slice %16 {offsets = [0, 0], sizes = [8, 8], strides = [1, 1]} : vector<16x8xf32> to vector<8x8xf32>
    %27 = arith.truncf %26 : vector<8x8xf32> to vector<8x8xbf16>
    %28 = vector.extract_strided_slice %23 {offsets = [0, 0], sizes = [8, 8], strides = [1, 1]} : vector<16x8xf32> to vector<8x8xf32>
    %29 = arith.truncf %28 : vector<8x8xf32> to vector<8x8xbf16>
    %cst_22 = arith.constant dense<0.000000e+00> : vector<8x8xf32>
    %30 = tpu.matmul %25, %27, %cst_22 {dimension_numbers = #tpu.dot_dimension_numbers<[1], [1], [0], [0], [0, 0, 1, 0], [], []>} : vector<8x8xbf16>, vector<8x8xbf16>, vector<8x8xf32> -> vector<8x8xf32>
    %cst_23 = arith.constant dense<0xFF800000> : vector<8xf32>
    %31 = vector.multi_reduction <maximumf>, %30, %cst_23 [1] : vector<8x8xf32> to vector<8xf32>
    %32 = vector.shape_cast %31 : vector<8xf32> to vector<8x1xf32>
    %33 = vector.broadcast %32 : vector<8x1xf32> to vector<8x8xf32>
    %34 = arith.subf %30, %33 : vector<8x8xf32>
    %35 = math.exp %34 : vector<8x8xf32>
    %cst_24 = arith.constant dense<0.000000e+00> : vector<8xf32>
    %36 = vector.multi_reduction <add>, %35, %cst_24 [1] : vector<8x8xf32> to vector<8xf32>
    %37 = vector.shape_cast %36 : vector<8xf32> to vector<8x1xf32>
    %38 = tpu.reciprocal %37 {approx = true} : vector<8x1xf32> -> vector<8x1xf32>
    %39 = vector.broadcast %38 : vector<8x1xf32> to vector<8x8xf32>
    %40 = arith.mulf %35, %39 : vector<8x8xf32>
    %41 = arith.truncf %40 : vector<8x8xf32> to vector<8x8xbf16>
    %cst_25 = arith.constant dense<0.000000e+00> : vector<8x8xf32>
    %42 = tpu.matmul %41, %29, %cst_25 {dimension_numbers = #tpu.dot_dimension_numbers<[1], [0], [0], [1], [0, 0, 1, 1], [], []>} : vector<8x8xbf16>, vector<8x8xbf16>, vector<8x8xf32> -> vector<8x8xf32>
    %43 = vector.extract_strided_slice %9 {offsets = [8, 0], sizes = [8, 8], strides = [1, 1]} : vector<16x8xf32> to vector<8x8xf32>
    %44 = arith.truncf %43 : vector<8x8xf32> to vector<8x8xbf16>
    %45 = vector.extract_strided_slice %16 {offsets = [8, 0], sizes = [8, 8], strides = [1, 1]} : vector<16x8xf32> to vector<8x8xf32>
    %46 = arith.truncf %45 : vector<8x8xf32> to vector<8x8xbf16>
    %47 = vector.extract_strided_slice %23 {offsets = [8, 0], sizes = [8, 8], strides = [1, 1]} : vector<16x8xf32> to vector<8x8xf32>
    %48 = arith.truncf %47 : vector<8x8xf32> to vector<8x8xbf16>
    %cst_26 = arith.constant dense<0.000000e+00> : vector<8x8xf32>
    %49 = tpu.matmul %44, %46, %cst_26 {dimension_numbers = #tpu.dot_dimension_numbers<[1], [1], [0], [0], [0, 0, 1, 0], [], []>} : vector<8x8xbf16>, vector<8x8xbf16>, vector<8x8xf32> -> vector<8x8xf32>
    %cst_27 = arith.constant dense<0xFF800000> : vector<8xf32>
    %50 = vector.multi_reduction <maximumf>, %49, %cst_27 [1] : vector<8x8xf32> to vector<8xf32>
    %51 = vector.shape_cast %50 : vector<8xf32> to vector<8x1xf32>
    %52 = vector.broadcast %51 : vector<8x1xf32> to vector<8x8xf32>
    %53 = arith.subf %49, %52 : vector<8x8xf32>
    %54 = math.exp %53 : vector<8x8xf32>
    %cst_28 = arith.constant dense<0.000000e+00> : vector<8xf32>
    %55 = vector.multi_reduction <add>, %54, %cst_28 [1] : vector<8x8xf32> to vector<8xf32>
    %56 = vector.shape_cast %55 : vector<8xf32> to vector<8x1xf32>
    %57 = tpu.reciprocal %56 {approx = true} : vector<8x1xf32> -> vector<8x1xf32>
    %58 = vector.broadcast %57 : vector<8x1xf32> to vector<8x8xf32>
    %59 = arith.mulf %54, %58 : vector<8x8xf32>
    %60 = arith.truncf %59 : vector<8x8xf32> to vector<8x8xbf16>
    %cst_29 = arith.constant dense<0.000000e+00> : vector<8x8xf32>
    %61 = tpu.matmul %60, %48, %cst_29 {dimension_numbers = #tpu.dot_dimension_numbers<[1], [0], [0], [1], [0, 0, 1, 1], [], []>} : vector<8x8xbf16>, vector<8x8xbf16>, vector<8x8xf32> -> vector<8x8xf32>
    %62 = tpu.concatenate %42, %61 in 0 : vector<8x8xf32>, vector<8x8xf32> -> vector<16x8xf32>
    %63 = arith.truncf %62 : vector<16x8xf32> to vector<16x8xbf16>
    %c0_30 = arith.constant 0 : index
    %c0_31 = arith.constant 0 : index
    %c0_32 = arith.constant 0 : index
    %64 = vector.load %arg8[%c0_30, %c0_31, %c0_32] : memref<4x8x32xbf16, #tpu.memory_space<vmem>>, vector<1x8x32xbf16>
    %65 = vector.shape_cast %64 : vector<1x8x32xbf16> to vector<8x32xbf16>
    %cst_33 = arith.constant dense<0.000000e+00> : vector<16x32xf32>
    %66 = tpu.matmul %63, %65, %cst_33 {dimension_numbers = #tpu.dot_dimension_numbers<[1], [0], [0], [1], [0, 0, 1, 1], [], []>} : vector<16x8xbf16>, vector<8x32xbf16>, vector<16x32xf32> -> vector<16x32xf32>
    %67 = arith.addf %2, %66 : vector<16x32xf32>
    %c1 = arith.constant 1 : index
    %c0_34 = arith.constant 0 : index
    %c0_35 = arith.constant 0 : index
    %68 = vector.load %arg2[%c1, %c0_34, %c0_35] : memref<4x32x8xbf16, #tpu.memory_space<vmem>>, vector<1x32x8xbf16>
    %69 = vector.shape_cast %68 : vector<1x32x8xbf16> to vector<32x8xbf16>
    %cst_36 = arith.constant dense<0.000000e+00> : vector<16x8xf32>
    %70 = tpu.matmul %1, %69, %cst_36 {dimension_numbers = #tpu.dot_dimension_numbers<[1], [0], [0], [1], [0, 0, 1, 1], [], []>} : vector<16x32xbf16>, vector<32x8xbf16>, vector<16x8xf32> -> vector<16x8xf32>
    %c1_37 = arith.constant 1 : index
    %c0_38 = arith.constant 0 : index
    %c0_39 = arith.constant 0 : index
    %71 = vector.load %arg3[%c1_37, %c0_38, %c0_39] : memref<4x1x8xf32, #tpu.memory_space<vmem>>, vector<1x1x8xf32>
    %72 = vector.shape_cast %71 : vector<1x1x8xf32> to vector<1x8xf32>
    %73 = vector.broadcast %72 : vector<1x8xf32> to vector<16x8xf32>
    %74 = arith.addf %70, %73 : vector<16x8xf32>
    %c1_40 = arith.constant 1 : index
    %c0_41 = arith.constant 0 : index
    %c0_42 = arith.constant 0 : index
    %75 = vector.load %arg4[%c1_40, %c0_41, %c0_42] : memref<4x32x8xbf16, #tpu.memory_space<vmem>>, vector<1x32x8xbf16>
    %76 = vector.shape_cast %75 : vector<1x32x8xbf16> to vector<32x8xbf16>
    %cst_43 = arith.constant dense<0.000000e+00> : vector<16x8xf32>
    %77 = tpu.matmul %1, %76, %cst_43 {dimension_numbers = #tpu.dot_dimension_numbers<[1], [0], [0], [1], [0, 0, 1, 1], [], []>} : vector<16x32xbf16>, vector<32x8xbf16>, vector<16x8xf32> -> vector<16x8xf32>
    %c1_44 = arith.constant 1 : index
    %c0_45 = arith.constant 0 : index
    %c0_46 = arith.constant 0 : index
    %78 = vector.load %arg5[%c1_44, %c0_45, %c0_46] : memref<4x1x8xf32, #tpu.memory_space<vmem>>, vector<1x1x8xf32>
    %79 = vector.shape_cast %78 : vector<1x1x8xf32> to vector<1x8xf32>
    %80 = vector.broadcast %79 : vector<1x8xf32> to vector<16x8xf32>
    %81 = arith.addf %77, %80 : vector<16x8xf32>
    %c1_47 = arith.constant 1 : index
    %c0_48 = arith.constant 0 : index
    %c0_49 = arith.constant 0 : index
    %82 = vector.load %arg6[%c1_47, %c0_48, %c0_49] : memref<4x32x8xbf16, #tpu.memory_space<vmem>>, vector<1x32x8xbf16>
    %83 = vector.shape_cast %82 : vector<1x32x8xbf16> to vector<32x8xbf16>
    %cst_50 = arith.constant dense<0.000000e+00> : vector<16x8xf32>
    %84 = tpu.matmul %1, %83, %cst_50 {dimension_numbers = #tpu.dot_dimension_numbers<[1], [0], [0], [1], [0, 0, 1, 1], [], []>} : vector<16x32xbf16>, vector<32x8xbf16>, vector<16x8xf32> -> vector<16x8xf32>
    %c1_51 = arith.constant 1 : index
    %c0_52 = arith.constant 0 : index
    %c0_53 = arith.constant 0 : index
    %85 = vector.load %arg7[%c1_51, %c0_52, %c0_53] : memref<4x1x8xf32, #tpu.memory_space<vmem>>, vector<1x1x8xf32>
    %86 = vector.shape_cast %85 : vector<1x1x8xf32> to vector<1x8xf32>
    %87 = vector.broadcast %86 : vector<1x8xf32> to vector<16x8xf32>
    %88 = arith.addf %84, %87 : vector<16x8xf32>
    %89 = vector.extract_strided_slice %74 {offsets = [0, 0], sizes = [8, 8], strides = [1, 1]} : vector<16x8xf32> to vector<8x8xf32>
    %90 = arith.truncf %89 : vector<8x8xf32> to vector<8x8xbf16>
    %91 = vector.extract_strided_slice %81 {offsets = [0, 0], sizes = [8, 8], strides = [1, 1]} : vector<16x8xf32> to vector<8x8xf32>
    %92 = arith.truncf %91 : vector<8x8xf32> to vector<8x8xbf16>
    %93 = vector.extract_strided_slice %88 {offsets = [0, 0], sizes = [8, 8], strides = [1, 1]} : vector<16x8xf32> to vector<8x8xf32>
    %94 = arith.truncf %93 : vector<8x8xf32> to vector<8x8xbf16>
    %cst_54 = arith.constant dense<0.000000e+00> : vector<8x8xf32>
    %95 = tpu.matmul %90, %92, %cst_54 {dimension_numbers = #tpu.dot_dimension_numbers<[1], [1], [0], [0], [0, 0, 1, 0], [], []>} : vector<8x8xbf16>, vector<8x8xbf16>, vector<8x8xf32> -> vector<8x8xf32>
    %cst_55 = arith.constant dense<0xFF800000> : vector<8xf32>
    %96 = vector.multi_reduction <maximumf>, %95, %cst_55 [1] : vector<8x8xf32> to vector<8xf32>
    %97 = vector.shape_cast %96 : vector<8xf32> to vector<8x1xf32>
    %98 = vector.broadcast %97 : vector<8x1xf32> to vector<8x8xf32>
    %99 = arith.subf %95, %98 : vector<8x8xf32>
    %100 = math.exp %99 : vector<8x8xf32>
    %cst_56 = arith.constant dense<0.000000e+00> : vector<8xf32>
    %101 = vector.multi_reduction <add>, %100, %cst_56 [1] : vector<8x8xf32> to vector<8xf32>
    %102 = vector.shape_cast %101 : vector<8xf32> to vector<8x1xf32>
    %103 = tpu.reciprocal %102 {approx = true} : vector<8x1xf32> -> vector<8x1xf32>
    %104 = vector.broadcast %103 : vector<8x1xf32> to vector<8x8xf32>
    %105 = arith.mulf %100, %104 : vector<8x8xf32>
    %106 = arith.truncf %105 : vector<8x8xf32> to vector<8x8xbf16>
    %cst_57 = arith.constant dense<0.000000e+00> : vector<8x8xf32>
    %107 = tpu.matmul %106, %94, %cst_57 {dimension_numbers = #tpu.dot_dimension_numbers<[1], [0], [0], [1], [0, 0, 1, 1], [], []>} : vector<8x8xbf16>, vector<8x8xbf16>, vector<8x8xf32> -> vector<8x8xf32>
    %108 = vector.extract_strided_slice %74 {offsets = [8, 0], sizes = [8, 8], strides = [1, 1]} : vector<16x8xf32> to vector<8x8xf32>
    %109 = arith.truncf %108 : vector<8x8xf32> to vector<8x8xbf16>
    %110 = vector.extract_strided_slice %81 {offsets = [8, 0], sizes = [8, 8], strides = [1, 1]} : vector<16x8xf32> to vector<8x8xf32>
    %111 = arith.truncf %110 : vector<8x8xf32> to vector<8x8xbf16>
    %112 = vector.extract_strided_slice %88 {offsets = [8, 0], sizes = [8, 8], strides = [1, 1]} : vector<16x8xf32> to vector<8x8xf32>
    %113 = arith.truncf %112 : vector<8x8xf32> to vector<8x8xbf16>
    %cst_58 = arith.constant dense<0.000000e+00> : vector<8x8xf32>
    %114 = tpu.matmul %109, %111, %cst_58 {dimension_numbers = #tpu.dot_dimension_numbers<[1], [1], [0], [0], [0, 0, 1, 0], [], []>} : vector<8x8xbf16>, vector<8x8xbf16>, vector<8x8xf32> -> vector<8x8xf32>
    %cst_59 = arith.constant dense<0xFF800000> : vector<8xf32>
    %115 = vector.multi_reduction <maximumf>, %114, %cst_59 [1] : vector<8x8xf32> to vector<8xf32>
    %116 = vector.shape_cast %115 : vector<8xf32> to vector<8x1xf32>
    %117 = vector.broadcast %116 : vector<8x1xf32> to vector<8x8xf32>
    %118 = arith.subf %114, %117 : vector<8x8xf32>
    %119 = math.exp %118 : vector<8x8xf32>
    %cst_60 = arith.constant dense<0.000000e+00> : vector<8xf32>
    %120 = vector.multi_reduction <add>, %119, %cst_60 [1] : vector<8x8xf32> to vector<8xf32>
    %121 = vector.shape_cast %120 : vector<8xf32> to vector<8x1xf32>
    %122 = tpu.reciprocal %121 {approx = true} : vector<8x1xf32> -> vector<8x1xf32>
    %123 = vector.broadcast %122 : vector<8x1xf32> to vector<8x8xf32>
    %124 = arith.mulf %119, %123 : vector<8x8xf32>
    %125 = arith.truncf %124 : vector<8x8xf32> to vector<8x8xbf16>
    %cst_61 = arith.constant dense<0.000000e+00> : vector<8x8xf32>
    %126 = tpu.matmul %125, %113, %cst_61 {dimension_numbers = #tpu.dot_dimension_numbers<[1], [0], [0], [1], [0, 0, 1, 1], [], []>} : vector<8x8xbf16>, vector<8x8xbf16>, vector<8x8xf32> -> vector<8x8xf32>
    %127 = tpu.concatenate %107, %126 in 0 : vector<8x8xf32>, vector<8x8xf32> -> vector<16x8xf32>
    %128 = arith.truncf %127 : vector<16x8xf32> to vector<16x8xbf16>
    %c1_62 = arith.constant 1 : index
    %c0_63 = arith.constant 0 : index
    %c0_64 = arith.constant 0 : index
    %129 = vector.load %arg8[%c1_62, %c0_63, %c0_64] : memref<4x8x32xbf16, #tpu.memory_space<vmem>>, vector<1x8x32xbf16>
    %130 = vector.shape_cast %129 : vector<1x8x32xbf16> to vector<8x32xbf16>
    %cst_65 = arith.constant dense<0.000000e+00> : vector<16x32xf32>
    %131 = tpu.matmul %128, %130, %cst_65 {dimension_numbers = #tpu.dot_dimension_numbers<[1], [0], [0], [1], [0, 0, 1, 1], [], []>} : vector<16x8xbf16>, vector<8x32xbf16>, vector<16x32xf32> -> vector<16x32xf32>
    %132 = arith.addf %67, %131 : vector<16x32xf32>
    %c2 = arith.constant 2 : index
    %c0_66 = arith.constant 0 : index
    %c0_67 = arith.constant 0 : index
    %133 = vector.load %arg2[%c2, %c0_66, %c0_67] : memref<4x32x8xbf16, #tpu.memory_space<vmem>>, vector<1x32x8xbf16>
    %134 = vector.shape_cast %133 : vector<1x32x8xbf16> to vector<32x8xbf16>
    %cst_68 = arith.constant dense<0.000000e+00> : vector<16x8xf32>
    %135 = tpu.matmul %1, %134, %cst_68 {dimension_numbers = #tpu.dot_dimension_numbers<[1], [0], [0], [1], [0, 0, 1, 1], [], []>} : vector<16x32xbf16>, vector<32x8xbf16>, vector<16x8xf32> -> vector<16x8xf32>
    %c2_69 = arith.constant 2 : index
    %c0_70 = arith.constant 0 : index
    %c0_71 = arith.constant 0 : index
    %136 = vector.load %arg3[%c2_69, %c0_70, %c0_71] : memref<4x1x8xf32, #tpu.memory_space<vmem>>, vector<1x1x8xf32>
    %137 = vector.shape_cast %136 : vector<1x1x8xf32> to vector<1x8xf32>
    %138 = vector.broadcast %137 : vector<1x8xf32> to vector<16x8xf32>
    %139 = arith.addf %135, %138 : vector<16x8xf32>
    %c2_72 = arith.constant 2 : index
    %c0_73 = arith.constant 0 : index
    %c0_74 = arith.constant 0 : index
    %140 = vector.load %arg4[%c2_72, %c0_73, %c0_74] : memref<4x32x8xbf16, #tpu.memory_space<vmem>>, vector<1x32x8xbf16>
    %141 = vector.shape_cast %140 : vector<1x32x8xbf16> to vector<32x8xbf16>
    %cst_75 = arith.constant dense<0.000000e+00> : vector<16x8xf32>
    %142 = tpu.matmul %1, %141, %cst_75 {dimension_numbers = #tpu.dot_dimension_numbers<[1], [0], [0], [1], [0, 0, 1, 1], [], []>} : vector<16x32xbf16>, vector<32x8xbf16>, vector<16x8xf32> -> vector<16x8xf32>
    %c2_76 = arith.constant 2 : index
    %c0_77 = arith.constant 0 : index
    %c0_78 = arith.constant 0 : index
    %143 = vector.load %arg5[%c2_76, %c0_77, %c0_78] : memref<4x1x8xf32, #tpu.memory_space<vmem>>, vector<1x1x8xf32>
    %144 = vector.shape_cast %143 : vector<1x1x8xf32> to vector<1x8xf32>
    %145 = vector.broadcast %144 : vector<1x8xf32> to vector<16x8xf32>
    %146 = arith.addf %142, %145 : vector<16x8xf32>
    %c2_79 = arith.constant 2 : index
    %c0_80 = arith.constant 0 : index
    %c0_81 = arith.constant 0 : index
    %147 = vector.load %arg6[%c2_79, %c0_80, %c0_81] : memref<4x32x8xbf16, #tpu.memory_space<vmem>>, vector<1x32x8xbf16>
    %148 = vector.shape_cast %147 : vector<1x32x8xbf16> to vector<32x8xbf16>
    %cst_82 = arith.constant dense<0.000000e+00> : vector<16x8xf32>
    %149 = tpu.matmul %1, %148, %cst_82 {dimension_numbers = #tpu.dot_dimension_numbers<[1], [0], [0], [1], [0, 0, 1, 1], [], []>} : vector<16x32xbf16>, vector<32x8xbf16>, vector<16x8xf32> -> vector<16x8xf32>
    %c2_83 = arith.constant 2 : index
    %c0_84 = arith.constant 0 : index
    %c0_85 = arith.constant 0 : index
    %150 = vector.load %arg7[%c2_83, %c0_84, %c0_85] : memref<4x1x8xf32, #tpu.memory_space<vmem>>, vector<1x1x8xf32>
    %151 = vector.shape_cast %150 : vector<1x1x8xf32> to vector<1x8xf32>
    %152 = vector.broadcast %151 : vector<1x8xf32> to vector<16x8xf32>
    %153 = arith.addf %149, %152 : vector<16x8xf32>
    %154 = vector.extract_strided_slice %139 {offsets = [0, 0], sizes = [8, 8], strides = [1, 1]} : vector<16x8xf32> to vector<8x8xf32>
    %155 = arith.truncf %154 : vector<8x8xf32> to vector<8x8xbf16>
    %156 = vector.extract_strided_slice %146 {offsets = [0, 0], sizes = [8, 8], strides = [1, 1]} : vector<16x8xf32> to vector<8x8xf32>
    %157 = arith.truncf %156 : vector<8x8xf32> to vector<8x8xbf16>
    %158 = vector.extract_strided_slice %153 {offsets = [0, 0], sizes = [8, 8], strides = [1, 1]} : vector<16x8xf32> to vector<8x8xf32>
    %159 = arith.truncf %158 : vector<8x8xf32> to vector<8x8xbf16>
    %cst_86 = arith.constant dense<0.000000e+00> : vector<8x8xf32>
    %160 = tpu.matmul %155, %157, %cst_86 {dimension_numbers = #tpu.dot_dimension_numbers<[1], [1], [0], [0], [0, 0, 1, 0], [], []>} : vector<8x8xbf16>, vector<8x8xbf16>, vector<8x8xf32> -> vector<8x8xf32>
    %cst_87 = arith.constant dense<0xFF800000> : vector<8xf32>
    %161 = vector.multi_reduction <maximumf>, %160, %cst_87 [1] : vector<8x8xf32> to vector<8xf32>
    %162 = vector.shape_cast %161 : vector<8xf32> to vector<8x1xf32>
    %163 = vector.broadcast %162 : vector<8x1xf32> to vector<8x8xf32>
    %164 = arith.subf %160, %163 : vector<8x8xf32>
    %165 = math.exp %164 : vector<8x8xf32>
    %cst_88 = arith.constant dense<0.000000e+00> : vector<8xf32>
    %166 = vector.multi_reduction <add>, %165, %cst_88 [1] : vector<8x8xf32> to vector<8xf32>
    %167 = vector.shape_cast %166 : vector<8xf32> to vector<8x1xf32>
    %168 = tpu.reciprocal %167 {approx = true} : vector<8x1xf32> -> vector<8x1xf32>
    %169 = vector.broadcast %168 : vector<8x1xf32> to vector<8x8xf32>
    %170 = arith.mulf %165, %169 : vector<8x8xf32>
    %171 = arith.truncf %170 : vector<8x8xf32> to vector<8x8xbf16>
    %cst_89 = arith.constant dense<0.000000e+00> : vector<8x8xf32>
    %172 = tpu.matmul %171, %159, %cst_89 {dimension_numbers = #tpu.dot_dimension_numbers<[1], [0], [0], [1], [0, 0, 1, 1], [], []>} : vector<8x8xbf16>, vector<8x8xbf16>, vector<8x8xf32> -> vector<8x8xf32>
    %173 = vector.extract_strided_slice %139 {offsets = [8, 0], sizes = [8, 8], strides = [1, 1]} : vector<16x8xf32> to vector<8x8xf32>
    %174 = arith.truncf %173 : vector<8x8xf32> to vector<8x8xbf16>
    %175 = vector.extract_strided_slice %146 {offsets = [8, 0], sizes = [8, 8], strides = [1, 1]} : vector<16x8xf32> to vector<8x8xf32>
    %176 = arith.truncf %175 : vector<8x8xf32> to vector<8x8xbf16>
    %177 = vector.extract_strided_slice %153 {offsets = [8, 0], sizes = [8, 8], strides = [1, 1]} : vector<16x8xf32> to vector<8x8xf32>
    %178 = arith.truncf %177 : vector<8x8xf32> to vector<8x8xbf16>
    %cst_90 = arith.constant dense<0.000000e+00> : vector<8x8xf32>
    %179 = tpu.matmul %174, %176, %cst_90 {dimension_numbers = #tpu.dot_dimension_numbers<[1], [1], [0], [0], [0, 0, 1, 0], [], []>} : vector<8x8xbf16>, vector<8x8xbf16>, vector<8x8xf32> -> vector<8x8xf32>
    %cst_91 = arith.constant dense<0xFF800000> : vector<8xf32>
    %180 = vector.multi_reduction <maximumf>, %179, %cst_91 [1] : vector<8x8xf32> to vector<8xf32>
    %181 = vector.shape_cast %180 : vector<8xf32> to vector<8x1xf32>
    %182 = vector.broadcast %181 : vector<8x1xf32> to vector<8x8xf32>
    %183 = arith.subf %179, %182 : vector<8x8xf32>
    %184 = math.exp %183 : vector<8x8xf32>
    %cst_92 = arith.constant dense<0.000000e+00> : vector<8xf32>
    %185 = vector.multi_reduction <add>, %184, %cst_92 [1] : vector<8x8xf32> to vector<8xf32>
    %186 = vector.shape_cast %185 : vector<8xf32> to vector<8x1xf32>
    %187 = tpu.reciprocal %186 {approx = true} : vector<8x1xf32> -> vector<8x1xf32>
    %188 = vector.broadcast %187 : vector<8x1xf32> to vector<8x8xf32>
    %189 = arith.mulf %184, %188 : vector<8x8xf32>
    %190 = arith.truncf %189 : vector<8x8xf32> to vector<8x8xbf16>
    %cst_93 = arith.constant dense<0.000000e+00> : vector<8x8xf32>
    %191 = tpu.matmul %190, %178, %cst_93 {dimension_numbers = #tpu.dot_dimension_numbers<[1], [0], [0], [1], [0, 0, 1, 1], [], []>} : vector<8x8xbf16>, vector<8x8xbf16>, vector<8x8xf32> -> vector<8x8xf32>
    %192 = tpu.concatenate %172, %191 in 0 : vector<8x8xf32>, vector<8x8xf32> -> vector<16x8xf32>
    %193 = arith.truncf %192 : vector<16x8xf32> to vector<16x8xbf16>
    %c2_94 = arith.constant 2 : index
    %c0_95 = arith.constant 0 : index
    %c0_96 = arith.constant 0 : index
    %194 = vector.load %arg8[%c2_94, %c0_95, %c0_96] : memref<4x8x32xbf16, #tpu.memory_space<vmem>>, vector<1x8x32xbf16>
    %195 = vector.shape_cast %194 : vector<1x8x32xbf16> to vector<8x32xbf16>
    %cst_97 = arith.constant dense<0.000000e+00> : vector<16x32xf32>
    %196 = tpu.matmul %193, %195, %cst_97 {dimension_numbers = #tpu.dot_dimension_numbers<[1], [0], [0], [1], [0, 0, 1, 1], [], []>} : vector<16x8xbf16>, vector<8x32xbf16>, vector<16x32xf32> -> vector<16x32xf32>
    %197 = arith.addf %132, %196 : vector<16x32xf32>
    %c3 = arith.constant 3 : index
    %c0_98 = arith.constant 0 : index
    %c0_99 = arith.constant 0 : index
    %198 = vector.load %arg2[%c3, %c0_98, %c0_99] : memref<4x32x8xbf16, #tpu.memory_space<vmem>>, vector<1x32x8xbf16>
    %199 = vector.shape_cast %198 : vector<1x32x8xbf16> to vector<32x8xbf16>
    %cst_100 = arith.constant dense<0.000000e+00> : vector<16x8xf32>
    %200 = tpu.matmul %1, %199, %cst_100 {dimension_numbers = #tpu.dot_dimension_numbers<[1], [0], [0], [1], [0, 0, 1, 1], [], []>} : vector<16x32xbf16>, vector<32x8xbf16>, vector<16x8xf32> -> vector<16x8xf32>
    %c3_101 = arith.constant 3 : index
    %c0_102 = arith.constant 0 : index
    %c0_103 = arith.constant 0 : index
    %201 = vector.load %arg3[%c3_101, %c0_102, %c0_103] : memref<4x1x8xf32, #tpu.memory_space<vmem>>, vector<1x1x8xf32>
    %202 = vector.shape_cast %201 : vector<1x1x8xf32> to vector<1x8xf32>
    %203 = vector.broadcast %202 : vector<1x8xf32> to vector<16x8xf32>
    %204 = arith.addf %200, %203 : vector<16x8xf32>
    %c3_104 = arith.constant 3 : index
    %c0_105 = arith.constant 0 : index
    %c0_106 = arith.constant 0 : index
    %205 = vector.load %arg4[%c3_104, %c0_105, %c0_106] : memref<4x32x8xbf16, #tpu.memory_space<vmem>>, vector<1x32x8xbf16>
    %206 = vector.shape_cast %205 : vector<1x32x8xbf16> to vector<32x8xbf16>
    %cst_107 = arith.constant dense<0.000000e+00> : vector<16x8xf32>
    %207 = tpu.matmul %1, %206, %cst_107 {dimension_numbers = #tpu.dot_dimension_numbers<[1], [0], [0], [1], [0, 0, 1, 1], [], []>} : vector<16x32xbf16>, vector<32x8xbf16>, vector<16x8xf32> -> vector<16x8xf32>
    %c3_108 = arith.constant 3 : index
    %c0_109 = arith.constant 0 : index
    %c0_110 = arith.constant 0 : index
    %208 = vector.load %arg5[%c3_108, %c0_109, %c0_110] : memref<4x1x8xf32, #tpu.memory_space<vmem>>, vector<1x1x8xf32>
    %209 = vector.shape_cast %208 : vector<1x1x8xf32> to vector<1x8xf32>
    %210 = vector.broadcast %209 : vector<1x8xf32> to vector<16x8xf32>
    %211 = arith.addf %207, %210 : vector<16x8xf32>
    %c3_111 = arith.constant 3 : index
    %c0_112 = arith.constant 0 : index
    %c0_113 = arith.constant 0 : index
    %212 = vector.load %arg6[%c3_111, %c0_112, %c0_113] : memref<4x32x8xbf16, #tpu.memory_space<vmem>>, vector<1x32x8xbf16>
    %213 = vector.shape_cast %212 : vector<1x32x8xbf16> to vector<32x8xbf16>
    %cst_114 = arith.constant dense<0.000000e+00> : vector<16x8xf32>
    %214 = tpu.matmul %1, %213, %cst_114 {dimension_numbers = #tpu.dot_dimension_numbers<[1], [0], [0], [1], [0, 0, 1, 1], [], []>} : vector<16x32xbf16>, vector<32x8xbf16>, vector<16x8xf32> -> vector<16x8xf32>
    %c3_115 = arith.constant 3 : index
    %c0_116 = arith.constant 0 : index
    %c0_117 = arith.constant 0 : index
    %215 = vector.load %arg7[%c3_115, %c0_116, %c0_117] : memref<4x1x8xf32, #tpu.memory_space<vmem>>, vector<1x1x8xf32>
    %216 = vector.shape_cast %215 : vector<1x1x8xf32> to vector<1x8xf32>
    %217 = vector.broadcast %216 : vector<1x8xf32> to vector<16x8xf32>
    %218 = arith.addf %214, %217 : vector<16x8xf32>
    %219 = vector.extract_strided_slice %204 {offsets = [0, 0], sizes = [8, 8], strides = [1, 1]} : vector<16x8xf32> to vector<8x8xf32>
    %220 = arith.truncf %219 : vector<8x8xf32> to vector<8x8xbf16>
    %221 = vector.extract_strided_slice %211 {offsets = [0, 0], sizes = [8, 8], strides = [1, 1]} : vector<16x8xf32> to vector<8x8xf32>
    %222 = arith.truncf %221 : vector<8x8xf32> to vector<8x8xbf16>
    %223 = vector.extract_strided_slice %218 {offsets = [0, 0], sizes = [8, 8], strides = [1, 1]} : vector<16x8xf32> to vector<8x8xf32>
    %224 = arith.truncf %223 : vector<8x8xf32> to vector<8x8xbf16>
    %cst_118 = arith.constant dense<0.000000e+00> : vector<8x8xf32>
    %225 = tpu.matmul %220, %222, %cst_118 {dimension_numbers = #tpu.dot_dimension_numbers<[1], [1], [0], [0], [0, 0, 1, 0], [], []>} : vector<8x8xbf16>, vector<8x8xbf16>, vector<8x8xf32> -> vector<8x8xf32>
    %cst_119 = arith.constant dense<0xFF800000> : vector<8xf32>
    %226 = vector.multi_reduction <maximumf>, %225, %cst_119 [1] : vector<8x8xf32> to vector<8xf32>
    %227 = vector.shape_cast %226 : vector<8xf32> to vector<8x1xf32>
    %228 = vector.broadcast %227 : vector<8x1xf32> to vector<8x8xf32>
    %229 = arith.subf %225, %228 : vector<8x8xf32>
    %230 = math.exp %229 : vector<8x8xf32>
    %cst_120 = arith.constant dense<0.000000e+00> : vector<8xf32>
    %231 = vector.multi_reduction <add>, %230, %cst_120 [1] : vector<8x8xf32> to vector<8xf32>
    %232 = vector.shape_cast %231 : vector<8xf32> to vector<8x1xf32>
    %233 = tpu.reciprocal %232 {approx = true} : vector<8x1xf32> -> vector<8x1xf32>
    %234 = vector.broadcast %233 : vector<8x1xf32> to vector<8x8xf32>
    %235 = arith.mulf %230, %234 : vector<8x8xf32>
    %236 = arith.truncf %235 : vector<8x8xf32> to vector<8x8xbf16>
    %cst_121 = arith.constant dense<0.000000e+00> : vector<8x8xf32>
    %237 = tpu.matmul %236, %224, %cst_121 {dimension_numbers = #tpu.dot_dimension_numbers<[1], [0], [0], [1], [0, 0, 1, 1], [], []>} : vector<8x8xbf16>, vector<8x8xbf16>, vector<8x8xf32> -> vector<8x8xf32>
    %238 = vector.extract_strided_slice %204 {offsets = [8, 0], sizes = [8, 8], strides = [1, 1]} : vector<16x8xf32> to vector<8x8xf32>
    %239 = arith.truncf %238 : vector<8x8xf32> to vector<8x8xbf16>
    %240 = vector.extract_strided_slice %211 {offsets = [8, 0], sizes = [8, 8], strides = [1, 1]} : vector<16x8xf32> to vector<8x8xf32>
    %241 = arith.truncf %240 : vector<8x8xf32> to vector<8x8xbf16>
    %242 = vector.extract_strided_slice %218 {offsets = [8, 0], sizes = [8, 8], strides = [1, 1]} : vector<16x8xf32> to vector<8x8xf32>
    %243 = arith.truncf %242 : vector<8x8xf32> to vector<8x8xbf16>
    %cst_122 = arith.constant dense<0.000000e+00> : vector<8x8xf32>
    %244 = tpu.matmul %239, %241, %cst_122 {dimension_numbers = #tpu.dot_dimension_numbers<[1], [1], [0], [0], [0, 0, 1, 0], [], []>} : vector<8x8xbf16>, vector<8x8xbf16>, vector<8x8xf32> -> vector<8x8xf32>
    %cst_123 = arith.constant dense<0xFF800000> : vector<8xf32>
    %245 = vector.multi_reduction <maximumf>, %244, %cst_123 [1] : vector<8x8xf32> to vector<8xf32>
    %246 = vector.shape_cast %245 : vector<8xf32> to vector<8x1xf32>
    %247 = vector.broadcast %246 : vector<8x1xf32> to vector<8x8xf32>
    %248 = arith.subf %244, %247 : vector<8x8xf32>
    %249 = math.exp %248 : vector<8x8xf32>
    %cst_124 = arith.constant dense<0.000000e+00> : vector<8xf32>
    %250 = vector.multi_reduction <add>, %249, %cst_124 [1] : vector<8x8xf32> to vector<8xf32>
    %251 = vector.shape_cast %250 : vector<8xf32> to vector<8x1xf32>
    %252 = tpu.reciprocal %251 {approx = true} : vector<8x1xf32> -> vector<8x1xf32>
    %253 = vector.broadcast %252 : vector<8x1xf32> to vector<8x8xf32>
    %254 = arith.mulf %249, %253 : vector<8x8xf32>
    %255 = arith.truncf %254 : vector<8x8xf32> to vector<8x8xbf16>
    %cst_125 = arith.constant dense<0.000000e+00> : vector<8x8xf32>
    %256 = tpu.matmul %255, %243, %cst_125 {dimension_numbers = #tpu.dot_dimension_numbers<[1], [0], [0], [1], [0, 0, 1, 1], [], []>} : vector<8x8xbf16>, vector<8x8xbf16>, vector<8x8xf32> -> vector<8x8xf32>
    %257 = tpu.concatenate %237, %256 in 0 : vector<8x8xf32>, vector<8x8xf32> -> vector<16x8xf32>
    %258 = arith.truncf %257 : vector<16x8xf32> to vector<16x8xbf16>
    %c3_126 = arith.constant 3 : index
    %c0_127 = arith.constant 0 : index
    %c0_128 = arith.constant 0 : index
    %259 = vector.load %arg8[%c3_126, %c0_127, %c0_128] : memref<4x8x32xbf16, #tpu.memory_space<vmem>>, vector<1x8x32xbf16>
    %260 = vector.shape_cast %259 : vector<1x8x32xbf16> to vector<8x32xbf16>
    %cst_129 = arith.constant dense<0.000000e+00> : vector<16x32xf32>
    %261 = tpu.matmul %258, %260, %cst_129 {dimension_numbers = #tpu.dot_dimension_numbers<[1], [0], [0], [1], [0, 0, 1, 1], [], []>} : vector<16x8xbf16>, vector<8x32xbf16>, vector<16x32xf32> -> vector<16x32xf32>
    %262 = arith.addf %197, %261 : vector<16x32xf32>
    %c0_130 = arith.constant 0 : index
    %c0_131 = arith.constant 0 : index
    %263 = vector.load %arg9[%c0_130, %c0_131] : memref<1x32xf32, #tpu.memory_space<vmem>>, vector<1x32xf32>
    %264 = vector.broadcast %263 : vector<1x32xf32> to vector<16x32xf32>
    %265 = arith.addf %262, %264 : vector<16x32xf32>
    %266 = arith.addf %0, %265 : vector<16x32xf32>
    %cst_132 = arith.constant dense<0.000000e+00> : vector<16xf32>
    %267 = vector.multi_reduction <add>, %266, %cst_132 [1] : vector<16x32xf32> to vector<16xf32>
    %268 = vector.shape_cast %267 : vector<16xf32> to vector<16x1xf32>
    %cst_133 = arith.constant 3.200000e+01 : f32
    %269 = vector.broadcast %cst_133 : f32 to vector<16x1xf32>
    %270 = arith.divf %268, %269 : vector<16x1xf32>
    %271 = vector.broadcast %270 : vector<16x1xf32> to vector<16x32xf32>
    %272 = arith.subf %266, %271 : vector<16x32xf32>
    %273 = arith.mulf %272, %272 : vector<16x32xf32>
    %cst_134 = arith.constant dense<0.000000e+00> : vector<16xf32>
    %274 = vector.multi_reduction <add>, %273, %cst_134 [1] : vector<16x32xf32> to vector<16xf32>
    %275 = vector.shape_cast %274 : vector<16xf32> to vector<16x1xf32>
    %cst_135 = arith.constant 3.200000e+01 : f32
    %276 = vector.broadcast %cst_135 : f32 to vector<16x1xf32>
    %277 = arith.divf %275, %276 : vector<16x1xf32>
    %278 = vector.broadcast %270 : vector<16x1xf32> to vector<16x32xf32>
    %279 = arith.subf %266, %278 : vector<16x32xf32>
    %cst_136 = arith.constant 1.000000e-01 : f32
    %280 = vector.broadcast %cst_136 : f32 to vector<16x1xf32>
    %281 = arith.addf %277, %280 : vector<16x1xf32>
    %282 = math.rsqrt %281 : vector<16x1xf32>
    %283 = vector.broadcast %282 : vector<16x1xf32> to vector<16x32xf32>
    %284 = arith.mulf %279, %283 : vector<16x32xf32>
    %c0_137 = arith.constant 0 : index
    %c0_138 = arith.constant 0 : index
    %285 = vector.load %arg10[%c0_137, %c0_138] : memref<1x32xf32, #tpu.memory_space<vmem>>, vector<1x32xf32>
    %286 = vector.broadcast %285 : vector<1x32xf32> to vector<16x32xf32>
    %287 = arith.mulf %284, %286 : vector<16x32xf32>
    %c0_139 = arith.constant 0 : index
    %c0_140 = arith.constant 0 : index
    %288 = vector.load %arg11[%c0_139, %c0_140] : memref<1x32xf32, #tpu.memory_space<vmem>>, vector<1x32xf32>
    %289 = vector.broadcast %288 : vector<1x32xf32> to vector<16x32xf32>
    %290 = arith.addf %287, %289 : vector<16x32xf32>
    %291 = arith.truncf %290 : vector<16x32xf32> to vector<16x32xbf16>
    %c0_141 = arith.constant 0 : index
    %c0_142 = arith.constant 0 : index
    %292 = vector.load %arg12[%c0_141, %c0_142] : memref<32x64xbf16, #tpu.memory_space<vmem>>, vector<32x64xbf16>
    %cst_143 = arith.constant dense<0.000000e+00> : vector<16x64xf32>
    %293 = tpu.matmul %291, %292, %cst_143 {dimension_numbers = #tpu.dot_dimension_numbers<[1], [0], [0], [1], [0, 0, 1, 1], [], []>} : vector<16x32xbf16>, vector<32x64xbf16>, vector<16x64xf32> -> vector<16x64xf32>
    %c0_144 = arith.constant 0 : index
    %c0_145 = arith.constant 0 : index
    %294 = vector.load %arg13[%c0_144, %c0_145] : memref<1x64xf32, #tpu.memory_space<vmem>>, vector<1x64xf32>
    %295 = vector.broadcast %294 : vector<1x64xf32> to vector<16x64xf32>
    %296 = arith.addf %293, %295 : vector<16x64xf32>
    %cst_146 = arith.constant 0.000000e+00 : f32
    %297 = vector.broadcast %cst_146 : f32 to vector<16x64xf32>
    %298 = arith.maximumf %296, %297 : vector<16x64xf32>
    %299 = arith.truncf %298 : vector<16x64xf32> to vector<16x64xbf16>
    %c0_147 = arith.constant 0 : index
    %c0_148 = arith.constant 0 : index
    %300 = vector.load %arg14[%c0_147, %c0_148] : memref<64x32xbf16, #tpu.memory_space<vmem>>, vector<64x32xbf16>
    %cst_149 = arith.constant dense<0.000000e+00> : vector<16x32xf32>
    %301 = tpu.matmul %299, %300, %cst_149 {dimension_numbers = #tpu.dot_dimension_numbers<[1], [0], [0], [1], [0, 0, 1, 1], [], []>} : vector<16x64xbf16>, vector<64x32xbf16>, vector<16x32xf32> -> vector<16x32xf32>
    %c0_150 = arith.constant 0 : index
    %c0_151 = arith.constant 0 : index
    %302 = vector.load %arg15[%c0_150, %c0_151] : memref<1x32xf32, #tpu.memory_space<vmem>>, vector<1x32xf32>
    %303 = vector.broadcast %302 : vector<1x32xf32> to vector<16x32xf32>
    %304 = arith.addf %301, %303 : vector<16x32xf32>
    %305 = arith.addf %290, %304 : vector<16x32xf32>
    %cst_152 = arith.constant dense<0.000000e+00> : vector<16xf32>
    %306 = vector.multi_reduction <add>, %305, %cst_152 [1] : vector<16x32xf32> to vector<16xf32>
    %307 = vector.shape_cast %306 : vector<16xf32> to vector<16x1xf32>
    %cst_153 = arith.constant 3.200000e+01 : f32
    %308 = vector.broadcast %cst_153 : f32 to vector<16x1xf32>
    %309 = arith.divf %307, %308 : vector<16x1xf32>
    %310 = vector.broadcast %309 : vector<16x1xf32> to vector<16x32xf32>
    %311 = arith.subf %305, %310 : vector<16x32xf32>
    %312 = arith.mulf %311, %311 : vector<16x32xf32>
    %cst_154 = arith.constant dense<0.000000e+00> : vector<16xf32>
    %313 = vector.multi_reduction <add>, %312, %cst_154 [1] : vector<16x32xf32> to vector<16xf32>
    %314 = vector.shape_cast %313 : vector<16xf32> to vector<16x1xf32>
    %cst_155 = arith.constant 3.200000e+01 : f32
    %315 = vector.broadcast %cst_155 : f32 to vector<16x1xf32>
    %316 = arith.divf %314, %315 : vector<16x1xf32>
    %317 = vector.broadcast %309 : vector<16x1xf32> to vector<16x32xf32>
    %318 = arith.subf %305, %317 : vector<16x32xf32>
    %cst_156 = arith.constant 1.000000e-01 : f32
    %319 = vector.broadcast %cst_156 : f32 to vector<16x1xf32>
    %320 = arith.addf %316, %319 : vector<16x1xf32>
    %321 = math.rsqrt %320 : vector<16x1xf32>
    %322 = vector.broadcast %321 : vector<16x1xf32> to vector<16x32xf32>
    %323 = arith.mulf %318, %322 : vector<16x32xf32>
    %c0_157 = arith.constant 0 : index
    %c0_158 = arith.constant 0 : index
    %324 = vector.load %arg16[%c0_157, %c0_158] : memref<1x32xf32, #tpu.memory_space<vmem>>, vector<1x32xf32>
    %325 = vector.broadcast %324 : vector<1x32xf32> to vector<16x32xf32>
    %326 = arith.mulf %323, %325 : vector<16x32xf32>
    %c0_159 = arith.constant 0 : index
    %c0_160 = arith.constant 0 : index
    %327 = vector.load %arg17[%c0_159, %c0_160] : memref<1x32xf32, #tpu.memory_space<vmem>>, vector<1x32xf32>
    %328 = vector.broadcast %327 : vector<1x32xf32> to vector<16x32xf32>
    %329 = arith.addf %326, %328 : vector<16x32xf32>
    %c0_161 = arith.constant 0 : index
    %c0_162 = arith.constant 0 : index
    %330 = vector.load %arg18[%c0_161, %c0_162] : memref<16x32xf32, #tpu.memory_space<vmem>>, vector<16x32xf32>
    tpu.vector_store %arg18[%c0_161, %c0_162], %329 {strides = array<i32>} : memref<16x32xf32, #tpu.memory_space<vmem>>, vector<16x32xf32>,
    return
  }
  func.func @transform_0(%arg0: i32) -> (i32, i32) {
    %c0_i32 = arith.constant 0 : i32
    %c0_i32_0 = arith.constant 0 : i32
    %c0_i32_1 = arith.constant 0 : i32
    return %c0_i32, %c0_i32_0 : i32, i32
  }
  func.func @transform_1(%arg0: i32) -> (i32, i32, i32) {
    %c0_i32 = arith.constant 0 : i32
    %c0_i32_0 = arith.constant 0 : i32
    %c0_i32_1 = arith.constant 0 : i32
    %c0_i32_2 = arith.constant 0 : i32
    return %c0_i32, %c0_i32_0, %c0_i32_1 : i32, i32, i32
  }
  func.func @transform_2(%arg0: i32) -> (i32, i32, i32) {
    %c0_i32 = arith.constant 0 : i32
    %c0_i32_0 = arith.constant 0 : i32
    %c0_i32_1 = arith.constant 0 : i32
    %c0_i32_2 = arith.constant 0 : i32
    return %c0_i32, %c0_i32_0, %c0_i32_1 : i32, i32, i32
  }
  func.func @transform_3(%arg0: i32) -> (i32, i32, i32) {
    %c0_i32 = arith.constant 0 : i32
    %c0_i32_0 = arith.constant 0 : i32
    %c0_i32_1 = arith.constant 0 : i32
    %c0_i32_2 = arith.constant 0 : i32
    return %c0_i32, %c0_i32_0, %c0_i32_1 : i32, i32, i32
  }
  func.func @transform_4(%arg0: i32) -> (i32, i32, i32) {
    %c0_i32 = arith.constant 0 : i32
    %c0_i32_0 = arith.constant 0 : i32
    %c0_i32_1 = arith.constant 0 : i32
    %c0_i32_2 = arith.constant 0 : i32
    return %c0_i32, %c0_i32_0, %c0_i32_1 : i32, i32, i32
  }
  func.func @transform_5(%arg0: i32) -> (i32, i32, i32) {
    %c0_i32 = arith.constant 0 : i32
    %c0_i32_0 = arith.constant 0 : i32
    %c0_i32_1 = arith.constant 0 : i32
    %c0_i32_2 = arith.constant 0 : i32
    return %c0_i32, %c0_i32_0, %c0_i32_1 : i32, i32, i32
  }
  func.func @transform_6(%arg0: i32) -> (i32, i32, i32) {
    %c0_i32 = arith.constant 0 : i32
    %c0_i32_0 = arith.constant 0 : i32
    %c0_i32_1 = arith.constant 0 : i32
    %c0_i32_2 = arith.constant 0 : i32
    return %c0_i32, %c0_i32_0, %c0_i32_1 : i32, i32, i32
  }
  func.func @transform_7(%arg0: i32) -> (i32, i32, i32) {
    %c0_i32 = arith.constant 0 : i32
    %c0_i32_0 = arith.constant 0 : i32
    %c0_i32_1 = arith.constant 0 : i32
    %c0_i32_2 = arith.constant 0 : i32
    return %c0_i32, %c0_i32_0, %c0_i32_1 : i32, i32, i32
  }
  func.func @transform_8(%arg0: i32) -> (i32, i32) {
    %c0_i32 = arith.constant 0 : i32
    %c0_i32_0 = arith.constant 0 : i32
    %c0_i32_1 = arith.constant 0 : i32
    return %c0_i32, %c0_i32_0 : i32, i32
  }
  func.func @transform_9(%arg0: i32) -> (i32, i32) {
    %c0_i32 = arith.constant 0 : i32
    %c0_i32_0 = arith.constant 0 : i32
    %c0_i32_1 = arith.constant 0 : i32
    return %c0_i32, %c0_i32_0 : i32, i32
  }
  func.func @transform_10(%arg0: i32) -> (i32, i32) {
    %c0_i32 = arith.constant 0 : i32
    %c0_i32_0 = arith.constant 0 : i32
    %c0_i32_1 = arith.constant 0 : i32
    return %c0_i32, %c0_i32_0 : i32, i32
  }
  func.func @transform_11(%arg0: i32) -> (i32, i32) {
    %c0_i32 = arith.constant 0 : i32
    %c0_i32_0 = arith.constant 0 : i32
    %c0_i32_1 = arith.constant 0 : i32
    return %c0_i32, %c0_i32_0 : i32, i32
  }
  func.func @transform_12(%arg0: i32) -> (i32, i32) {
    %c0_i32 = arith.constant 0 : i32
    %c0_i32_0 = arith.constant 0 : i32
    %c0_i32_1 = arith.constant 0 : i32
    return %c0_i32, %c0_i32_0 : i32, i32
  }
  func.func @transform_13(%arg0: i32) -> (i32, i32) {
    %c0_i32 = arith.constant 0 : i32
    %c0_i32_0 = arith.constant 0 : i32
    %c0_i32_1 = arith.constant 0 : i32
    return %c0_i32, %c0_i32_0 : i32, i32
  }
  func.func @transform_14(%arg0: i32) -> (i32, i32) {
    %c0_i32 = arith.constant 0 : i32
    %c0_i32_0 = arith.constant 0 : i32
    %c0_i32_1 = arith.constant 0 : i32
    return %c0_i32, %c0_i32_0 : i32, i32
  }
  func.func @transform_15(%arg0: i32) -> (i32, i32) {
    %c0_i32 = arith.constant 0 : i32
    %c0_i32_0 = arith.constant 0 : i32
    %c0_i32_1 = arith.constant 0 : i32
    return %c0_i32, %c0_i32_0 : i32, i32
  }
  func.func @transform_16(%arg0: i32) -> (i32, i32) {
    %c0_i32 = arith.constant 0 : i32
    %c0_i32_0 = arith.constant 0 : i32
    %c0_i32_1 = arith.constant 0 : i32
    return %c0_i32, %c0_i32_0 : i32, i32
  }
  func.func @transform_17(%arg0: i32) -> (i32, i32) {
    %c0_i32 = arith.constant 0 : i32
    %c0_i32_0 = arith.constant 0 : i32
    %c0_i32_1 = arith.constant 0 : i32
    return %c0_i32, %c0_i32_0 : i32, i32
  }
}

</mosaic_0001>

<bundles_post_ra>
// kernel: tpu_custom_call.1
= control target key start
LH: loop header
LB: loop body
LE: loop exit
PB: predicated region body
PF: predicated region fallthrough
CT: control target
= control target key end

     0   :  { %s3249_s0 = inlined_call_operand.vmem [shape: f32[16,32], index: 0, kind: input, shape index: {}]   ;;  %s3250_s1 = inlined_call_operand.vmem [shape: bf16[4,32,8], index: 1, kind: input, shape index: {}]   ;;  %s3251_s2 = inlined_call_operand.vmem [shape: f32[4,1,8], index: 2, kind: input, shape index: {}]   ;;  %s3252_s3 = inlined_call_operand.vmem [shape: bf16[4,32,8], index: 3, kind: input, shape index: {}]   ;;  %s3253_s4 = inlined_call_operand.vmem [shape: f32[4,1,8], index: 4, kind: input, shape index: {}]   ;;  %s3254_s5 = inlined_call_operand.vmem [shape: bf16[4,32,8], index: 5, kind: input, shape index: {}]   ;;  %s3255_s6 = inlined_call_operand.vmem [shape: f32[4,1,8], index: 6, kind: input, shape index: {}]   ;;  %s3256_s7 = inlined_call_operand.vmem [shape: bf16[4,8,32], index: 7, kind: input, shape index: {}]   ;;  %s3257_s8 = inlined_call_operand.vmem [shape: f32[1,32], index: 8, kind: input, shape index: {}]   ;;  %s3258_s9 = inlined_call_operand.vmem [shape: f32[1,32], index: 9, kind: input, shape index: {}]   ;;  %s3259_s10 = inlined_call_operand.vmem [shape: f32[1,32], index: 10, kind: input, shape index: {}]   ;;  %s3260_s11 = inlined_call_operand.vmem [shape: bf16[32,64], index: 11, kind: input, shape index: {}]   ;;  %s3261_s12 = inlined_call_operand.vmem [shape: f32[1,64], index: 12, kind: input, shape index: {}]   ;;  %s3262_s13 = inlined_call_operand.vmem [shape: bf16[64,32], index: 13, kind: input, shape index: {}]   ;;  %s3263_s14 = inlined_call_operand.vmem [shape: f32[1,32], index: 14, kind: input, shape index: {}]   ;;  %s3264_s15 = inlined_call_operand.vmem [shape: f32[1,32], index: 15, kind: input, shape index: {}]   ;;  %s3265_s16 = inlined_call_operand.vmem [shape: f32[1,32], index: 16, kind: input, shape index: {}]   ;;  %s3266_s17 = inlined_call_operand.hbm [shape: f32[16,32], index: 17, kind: output, shape index: {}]  }
   0x1   :  { %3269 = sst [smem:[#allocation5_spill]] %s3249_s0 }
   0x2   :  { %3270 = sst [smem:[#allocation6_spill]] %s3250_s1 }
   0x3   :  { %v2643_v0 = vld [vmem:[%s3252_s3] sm:$0xff]   ;;  %v2739_v1 = vmov 0.0   ;;  %v2644_v2 = vld [vmem:[%s3252_s3 + $0x8] sm:$0xff]   ;;  %s3271_s0 = sld [smem:[#allocation6_spill]]  ;;  %vm2740_vm0 = vmmov 0   ;;  %s3272_s19 = sld [smem:[#allocation5_spill]] }
   0x4   :  { %2410 = vmatprep.subr.bf16.mxu1 %v2739_v1  ;;  %2402 = vmatprep.subr.bf16.mxu0 %v2739_v1  ;;  %vm84_vm1 = vcmask 261120  }
   0x5   :  { %2411 = vmatpush3.bf16.msra.mxu1 %v2643_v0  ;;  %2414 = vmatprep.mubr.msk.bf16.mxu1 %vm2740_vm0, %v2739_v1 }
   0x6   :  { %2412 = vmatprep.subr.bf16.mxu1 %v2739_v1  ;;  %2406 = vmatprep.mubr.msk.bf16.mxu0 %vm2740_vm0, %v2739_v1 }
   0x9   :  { %v2645_v3 = vld [vmem:[%s3271_s0] sm:$0xff]   ;;  %v59_v5 = vld [vmem:[%s3272_s19 + $0x8] sm:$0xff]  ;;  %2413 = vmatpush3.bf16.msra.mxu1 %v2644_v2 }
   0xa   :  { %v58_v4 = vld [vmem:[%s3272_s19] sm:$0xff]  ;;  %2403 = vmatpush3.bf16.msra.mxu0 %v2645_v3  ;;  %v2646_v6 = vld [vmem:[%s3271_s0 + $0x8] sm:$0xff]   ;;  %2426 = vmatprep.subr.bf16.mxu1 %v2739_v1 }
   0xb   :  { %v2859_v7 = vpack.c.bf16 %v59_v5, %v58_v4  ;;  %2404 = vmatprep.subr.bf16.mxu0 %v2739_v1 }
   0xd   :  { %2415 = vmatmul.mubr.msk.bf16.vlgmr.msra.gmra.mrb[0].mxu1 %vm84_vm1, %v2859_v7 }
   0xe   :  { %2405 = vmatpush3.bf16.msra.mxu0 %v2646_v6  ;;  %2428 = vmatprep.mubr.msk.bf16.mxu1 %vm2740_vm0, %v2739_v1 }
   0xf   :  { %2418 = vmatprep.subr.bf16.mxu0 %v2739_v1 }
  0x11   :  { %2407 = vmatmul.mubr.msk.bf16.vlgmr.msra.gmra.mrb[0].mxu0 %vm84_vm1, %v2859_v7 }
  0x12   :  { %2422 = vmatprep.mubr.msk.bf16.mxu0 %vm2740_vm0, %v2739_v1 }
  0x13   :  { %22 = vsyncpa [#allocation3], 0  ;;  %v2191_v8 = vld [vmem:[%s3253_s4] ss:$0 sm:$0xff]  ;;  %vm260_vm2 = vcmask 64512   ;;  %v2648_v29 = vld [vmem:[%s3254_s5 + $0x8] sm:$0xff]  }
  0x14   :  { %v2187_v13 = vld [vmem:[%s3251_s2] ss:$0 sm:$0xff]  ;;  %vm322_vm3 = vcmask 1043456   ;;  %v2651_v59 = vld [vmem:[%s3271_s0 + $0x10] sm:$0xff]   ;;  %v2652_v60 = vld [vmem:[%s3271_s0 + $0x18] sm:$0xff]   ;;  %vm2078_vm4 = vcmask 523264  }
  0x15   :  { %v2647_v28 = vld [vmem:[%s3254_s5] sm:$0xff]   ;;  %s2741_s25 = smov [#allocation2]  }
  0x16   :  { %2419 = vmatpush3.bf16.msra.mxu0 %v2647_v28  ;;  %v2195_v52 = vld [vmem:[%s3255_s6] ss:$0 sm:$0xff]  ;;  %s2176_s26 = sshll.u32 %s2741_s25, 4  ;;  %s2177_s26 = int_to_ptr.vmem [resolvable:$true] %s2176_s26 }
  0x17   :  { %2420 = vmatprep.subr.bf16.mxu0 %v2739_v1  ;;  %s2715_s27 = scalar_lea.vmem %s2177_s26, 256  ;;  %p2720_p1 = scmp.lt.s32.totalorder %s2177_s26, %s2177_s26 }
  0x18   :  { %p2716_p0 = scmp.ne.s32.totalorder %s2177_s26, %s2715_s27  ;;  %p2721_p2 = scmp.lt.s32.totalorder %s2715_s27, %s2715_s27 }
  0x1a   :  { %2421 = vmatpush3.bf16.msra.mxu0 %v2648_v29  ;;  %v2208_v29 = vld [vmem:[%s3251_s2 + $0x1] ss:$0 sm:$0xff]  ;;  %p2722_p3 = por %p2721_p2, %p2720_p1 }
  0x1b   :  { %2432 = vmatprep.subr.bf16.mxu0 %v2739_v1 }
  0x1c   :  { %p2723_p4 = pnand %p2722_p3, %p2716_p0 }
  0x1d   :  { %2423 = vmatmul.mubr.msk.bf16.vlgmr.msra.gmra.mrb[4].mxu0 %vm84_vm1, %v2859_v7 }
  0x1e   :  { %2434 = vmatprep.mubr.msk.bf16.mxu0 %vm2740_vm0, %v2739_v1 }
  0xe0   :  { %v186_v9 = vpop.f32.mrb[0].mxu1 }
  0xe1   :  { %v187_v10 = vadd.f32 %v2191_v8, %v186_v9  ;;  %v2416_v11 = vpop.f32.mrb[1].mxu1 }
  0xe2   :  { %v189_v12 = vpop.f32.mrb[2].mxu1 }
  0xe3   :  { %v258_v15 = vpack.c.bf16 %v187_v10, %v187_v10  ;;  %v2417_v16 = vpop.f32.mrb[3].mxu1  ;;  %v190_v20 = vadd.f32 %v2191_v8, %v189_v12  ;;  %v2649_v8 = vld [vmem:[%s3252_s3 + $0x10] sm:$0xff]   ;;  %v2650_v10 = vld [vmem:[%s3252_s3 + $0x18] sm:$0xff]  }
  0xe4   :  { %v122_v14 = vpop.f32.mrb[0].mxu0 }
  0xe5   :  { %v2408_v17 = vpop.f32.mrb[1].mxu0  ;;  %v265_v19 = vsel %vm260_vm2, %v258_v15, 0  ;;  %v123_v21 = vadd.f32 %v2187_v13, %v122_v14  ;;  %v367_v23 = vpack.c.bf16 %v190_v20, %v190_v20 }
  0xe6   :  { %v125_v18 = vpop.f32.mrb[2].mxu0  ;;  %2427 = vmatpush3.bf16.xpose.msra.mxu1 %v265_v19 }
  0xe7   :  { %v2409_v22 = vpop.f32.mrb[3].mxu0  ;;  %2438 = vmatprep.subr.bf16.mxu1 %v2739_v1  ;;  %v257_v24 = vpack.c.bf16 %v123_v21, %v123_v21  ;;  %v373_v25 = vsel %vm260_vm2, %v367_v23, 0  ;;  %v126_v26 = vadd.f32 %v2187_v13, %v125_v18 }
  0xe9   :  { %v366_v27 = vpack.c.bf16 %v126_v26, %v126_v26 }
  0xed   :  { %2429 = vmatmul.mubr.msk.bf16.vlgmr.msra.gmra.mrb[4].mxu1 %vm260_vm2, %v257_v24  ;;  %v2217_v24 = vld [vmem:[%s3253_s4 + $0x1] ss:$0 sm:$0xff] }
  0xee   :  { %2439 = vmatpush3.bf16.xpose.msra.mxu1 %v373_v25  ;;  %2440 = vmatprep.mubr.msk.bf16.mxu1 %vm2740_vm0, %v2739_v1 }
  0xef   :  { %2450 = vmatprep.subr.bf16.mxu1 %v2739_v1 }
  0xf0   :  { %v250_v50 = vpop.f32.mrb[4].mxu0 }
  0xf1   :  { %v2424_v51 = vpop.f32.mrb[5].mxu0  ;;  %v251_v54 = vadd.f32 %v2195_v52, %v250_v50 }
  0xf2   :  { %v253_v53 = vpop.f32.mrb[6].mxu0 }
  0xf3   :  { %v2425_v55 = vpop.f32.mrb[7].mxu0  ;;  %v254_v56 = vadd.f32 %v2195_v52, %v253_v53  ;;  %v259_v57 = vpack.c.bf16 %v251_v54, %v251_v54  ;;  %v2226_v52 = vld [vmem:[%s3255_s6 + $0x1] ss:$0 sm:$0xff] }
  0xf5   :  { %2441 = vmatmul.mubr.msk.bf16.vlgmr.msra.gmra.mrb[8].mxu1 %vm260_vm2, %v366_v27  ;;  %v324_v58 = vsel %vm322_vm3, %v259_v57, 0  ;;  %v368_v2 = vpack.c.bf16 %v254_v56, %v254_v56 }
  0xf6   :  { %2454 = vmatprep.mubr.msk.bf16.mxu1 %vm2740_vm0, %v2739_v1  ;;  %2433 = vmatpush3.bf16.msra.mxu0 %v324_v58 }
  0xf7   :  { %2444 = vmatprep.subr.bf16.mxu0 %v2739_v1  ;;  %2451 = vmatpush3.bf16.msra.mxu1 %v2651_v59  ;;  %v431_v4 = vsel %vm322_vm3, %v368_v2, 0 }
  0xf8   :  { %2452 = vmatprep.subr.bf16.mxu1 %v2739_v1 }
  0xfb   :  { %2453 = vmatpush3.bf16.msra.mxu1 %v2652_v60 }
  0xfc   :  { %2466 = vmatprep.subr.bf16.mxu1 %v2739_v1 }
  0xfe   :  { %2455 = vmatmul.mubr.msk.bf16.vlgmr.msra.gmra.mrb[12].mxu1 %vm84_vm1, %v2859_v7 }
  0xff   :  { %2470 = vmatprep.mubr.msk.bf16.mxu1 %vm2740_vm0, %v2739_v1 }
 0x1c0   :  { %v301_v30 = vpop.f32.mrb[4].mxu1 }
 0x1c1   :  { %v2430_v31 = vpop.f32.mrb[5].mxu1  ;;  %v307_v32 = vsel %vm260_vm2, %v301_v30, -inf }
 0x1c2   :  { %308 = vmax.xlane.f32.xlu0 %v307_v32  ;;  %v304_v33 = vpop.f32.mrb[6].mxu1 }
 0x1c3   :  { %v2431_v34 = vpop.f32.mrb[7].mxu1 }
 0x1c8   :  { %v409_v35 = vpop.f32.mrb[8].mxu1 }
 0x1c9   :  { %v2442_v36 = vpop.f32.mrb[9].mxu1  ;;  %v415_v37 = vsel %vm260_vm2, %v409_v35, -inf }
 0x1ca   :  { %416 = vmax.xlane.f32.xlu0 %v415_v37  ;;  %v412_v38 = vpop.f32.mrb[10].mxu1 }
 0x1cb   :  { %v2443_v39 = vpop.f32.mrb[11].mxu1 }
 0x1d1   :  { %v534_v11 = vpop.f32.mrb[12].mxu1 }
 0x1d2   :  { %v2456_v12 = vpop.f32.mrb[13].mxu1  ;;  %v535_v34 = vadd.f32 %v2208_v29, %v534_v11 }
 0x1d3   :  { %v537_v13 = vpop.f32.mrb[14].mxu1 }
 0x1d4   :  { %v2457_v14 = vpop.f32.mrb[15].mxu1  ;;  %v673_v36 = vpack.c.bf16 %v535_v34, %v535_v34  ;;  %v538_v38 = vadd.f32 %v2208_v29, %v537_v13 }
 0x1d6   :  { %v780_v39 = vpack.c.bf16 %v538_v38, %v538_v38 }
 0x24f   :  { %v309_v40 = vpop.xlane.xlu0 %308 }
 0x250   :  { %v310_v41 = vsub.f32 %v301_v30, %v309_v40  ;;  %v2653_v40 = vld [vmem:[%s3254_s5 + $0x10] sm:$0xff]  }
 0x251   :  { %2467 = vmatpush3.bf16.msra.mxu1 %v2653_v40  ;;  %v2251_v40 = vld [vmem:[%s3253_s4 + $0x2] ss:$0 sm:$0xff] }
 0x252   :  { %v311_v42 = vmul.f32 1.442695, %v310_v41  ;;  %v2654_v41 = vld [vmem:[%s3254_s5 + $0x18] sm:$0xff]   ;;  %2468 = vmatprep.subr.bf16.mxu1 %v2739_v1 }
 0x254   :  { %2673 = vpow2.f32 %v311_v42 }
 0x255   :  { %2469 = vmatpush3.bf16.msra.mxu1 %v2654_v41 }
 0x256   :  { %2480 = vmatprep.subr.bf16.mxu1 %v2739_v1 }
 0x257   :  { %v417_v43 = vpop.xlane.xlu0 %416 }
 0x258   :  { %v418_v44 = vsub.f32 %v409_v35, %v417_v43  ;;  %2471 = vmatmul.mubr.msk.bf16.vlgmr.msra.gmra.mrb[16].mxu1 %vm84_vm1, %v2859_v7 }
 0x259   :  { %2482 = vmatprep.mubr.msk.bf16.mxu1 %vm2740_vm0, %v2739_v1 }
 0x25a   :  { %v419_v45 = vmul.f32 1.442695, %v418_v44 }
 0x25c   :  { %2675 = vpow2.f32 %v419_v45 }
 0x25e   :  { %v2674_v46 = vpop.eup %2673 }
 0x25f   :  { %v313_v47 = vsel %vm260_vm2, %v2674_v46, 0.0 }
 0x260   :  { %314 = vadd.xlane.f32.xlu1 %v313_v47 }
 0x266   :  { %v2676_v48 = vpop.eup %2675 }
 0x267   :  { %v421_v49 = vsel %vm260_vm2, %v2676_v48, 0.0 }
 0x268   :  { %422 = vadd.xlane.f32.xlu1 %v421_v49 }
 0x2ed   :  { %v315_v61 = vpop.xlane.xlu1 %314 }
 0x2ee   :  { %2677 = vrcp.f32 %v315_v61 }
 0x2f5   :  { %v423_v62 = vpop.xlane.xlu1 %422 }
 0x2f6   :  { %2679 = vrcp.f32 %v423_v62 }
 0x2f8   :  { %v2678_v63 = vpop.eup %2677 }
 0x2f9   :  { %v317_v0 = vmul.f32 %v2678_v63, %v2674_v46 }
 0x2fb   :  { %v318_v3 = vpack.c.bf16 %v317_v0, %v317_v0 }
 0x2fd   :  { %2435 = vmatmul.mubr.msk.bf16.vlgmr.msra.gmra.mrb[8].mxu0 %vm260_vm2, %v318_v3 }
 0x2fe   :  { %2445 = vmatpush3.bf16.msra.mxu0 %v431_v4  ;;  %2446 = vmatprep.mubr.msk.bf16.mxu0 %vm2740_vm0, %v2739_v1 }
 0x2ff   :  { %2458 = vmatprep.subr.bf16.mxu0 %v2739_v1 }
 0x300   :  { %v2680_v5 = vpop.eup %2679 }
 0x301   :  { %v425_v6 = vmul.f32 %v2680_v5, %v2676_v48 }
 0x303   :  { %v426_v9 = vpack.c.bf16 %v425_v6, %v425_v6 }
 0x305   :  { %2447 = vmatmul.mubr.msk.bf16.vlgmr.msra.gmra.mrb[12].mxu0 %vm260_vm2, %v426_v9 }
 0x306   :  { %2459 = vmatpush3.bf16.msra.mxu0 %v2649_v8  ;;  %2462 = vmatprep.mubr.msk.bf16.mxu0 %vm2740_vm0, %v2739_v1 }
 0x307   :  { %2460 = vmatprep.subr.bf16.mxu0 %v2739_v1 }
 0x30a   :  { %2461 = vmatpush3.bf16.msra.mxu0 %v2650_v10 }
 0x30b   :  { %2474 = vmatprep.subr.bf16.mxu0 %v2739_v1 }
 0x30d   :  { %2463 = vmatmul.mubr.msk.bf16.vlgmr.msra.gmra.mrb[16].mxu0 %vm84_vm1, %v2859_v7 }
 0x30e   :  { %2476 = vmatprep.mubr.msk.bf16.mxu0 %vm2740_vm0, %v2739_v1 }
 0x32b   :  { %v666_v53 = vpop.f32.mrb[16].mxu1 }
 0x32c   :  { %v667_v54 = vadd.f32 %v2226_v52, %v666_v53  ;;  %v2472_v55 = vpop.f32.mrb[17].mxu1 }
 0x32d   :  { %v669_v5 = vpop.f32.mrb[18].mxu1  ;;  %v2242_v55 = vld [vmem:[%s3251_s2 + $0x2] ss:$0 sm:$0xff] }
 0x32e   :  { %v675_v56 = vpack.c.bf16 %v667_v54, %v667_v54  ;;  %v2473_v6 = vpop.f32.mrb[19].mxu1  ;;  %v670_v9 = vadd.f32 %v2226_v52, %v669_v5 }
 0x330   :  { %v738_v57 = vsel %vm322_vm3, %v675_v56, 0  ;;  %v782_v13 = vpack.c.bf16 %v670_v9, %v670_v9 }
 0x331   :  { %2481 = vmatpush3.bf16.msra.mxu1 %v738_v57 }
 0x332   :  { %2492 = vmatprep.subr.bf16.mxu1 %v2739_v1 }
 0x3d0   :  { %v2941_v15 = vpop.f32.mrb[8].mxu0 }
 0x3d1   :  { %v2436_v16 = vpop.f32.mrb[9].mxu0 }
 0x3d2   :  { %v363_v17 = vpop.f32.mrb[10].mxu0  ;;  %v845_v16 = vsel %vm322_vm3, %v782_v13, 0 }
 0x3d3   :  { %v2437_v18 = vpop.f32.mrb[11].mxu0 }
 0x3d4   :  { %v474_v18 = vld [vmem:[%s3256_s7] sm:$0xf] }
 0x3d8   :  { %v2943_v19 = vpop.f32.mrb[12].mxu0 }
 0x3d9   :  { %v473_v20 = vpack.c.bf16 %v2943_v19, %v2941_v15  ;;  %v2448_v21 = vpop.f32.mrb[13].mxu0  ;;  %v2656_v15 = vld [vmem:[%s3252_s3 + $0x28] sm:$0xff]  }
 0x3da   :  { %v470_v22 = vpop.f32.mrb[14].mxu0 }
 0x3db   :  { %v2449_v23 = vpop.f32.mrb[15].mxu0 }
 0x3dc   :  { %v941_v23 = vsel %vm322_vm3, %v474_v18, 0 }
 0x3e0   :  { %v600_v25 = vpop.f32.mrb[16].mxu0 }
 0x3e1   :  { %v601_v26 = vadd.f32 %v2217_v24, %v600_v25  ;;  %v2464_v27 = vpop.f32.mrb[17].mxu0  ;;  %v2234_v25 = vld [vmem:[%s3256_s7 + $0x4] sm:$0xf] }
 0x3e2   :  { %v603_v28 = vpop.f32.mrb[18].mxu0  ;;  %v894_v19 = vsel %vm322_vm3, %v2234_v25, 0 }
 0x3e3   :  { %v674_v30 = vpack.c.bf16 %v601_v26, %v601_v26  ;;  %v2465_v31 = vpop.f32.mrb[19].mxu0  ;;  %v604_v33 = vadd.f32 %v2217_v24, %v603_v28  ;;  %v2655_v24 = vld [vmem:[%s3252_s3 + $0x20] sm:$0xff]  }
 0x3e5   :  { %v680_v32 = vsel %vm260_vm2, %v674_v30, 0  ;;  %v781_v35 = vpack.c.bf16 %v604_v33, %v604_v33  ;;  %v2657_v30 = vld [vmem:[%s3271_s0 + $0x20] sm:$0xff]  }
 0x3e6   :  { %2475 = vmatpush3.bf16.xpose.msra.mxu0 %v680_v32 }
 0x3e7   :  { %2486 = vmatprep.subr.bf16.mxu0 %v2739_v1  ;;  %v787_v37 = vsel %vm260_vm2, %v781_v35, 0  ;;  %v2658_v35 = vld [vmem:[%s3271_s0 + $0x28] sm:$0xff]  }
 0x3ed   :  { %2477 = vmatmul.mubr.msk.bf16.vlgmr.msra.gmra.mrb[20].mxu0 %vm260_vm2, %v673_v36 }
 0x3ee   :  { %2487 = vmatpush3.bf16.xpose.msra.mxu0 %v787_v37  ;;  %2488 = vmatprep.mubr.msk.bf16.mxu0 %vm2740_vm0, %v2739_v1 }
 0x3ef   :  { %2498 = vmatprep.subr.bf16.mxu0 %v2739_v1 }
 0x3f5   :  { %2489 = vmatmul.mubr.msk.bf16.vlgmr.msra.gmra.mrb[24].mxu0 %vm260_vm2, %v780_v39 }
 0x3f6   :  { %2500 = vmatprep.mubr.msk.bf16.mxu0 %vm2740_vm0, %v2739_v1  ;;  %2499 = vmatpush3.bf16.msra.mxu0 %v894_v19 }
 0x3f7   :  { %2510 = vmatprep.subr.bf16.mxu0 %v2739_v1 }
 0x4c0   :  { %v716_v42 = vpop.f32.mrb[20].mxu0 }
 0x4c1   :  { %v2478_v43 = vpop.f32.mrb[21].mxu0  ;;  %v722_v44 = vsel %vm260_vm2, %v716_v42, -inf }
 0x4c2   :  { %723 = vmax.xlane.f32.xlu0 %v722_v44  ;;  %v719_v45 = vpop.f32.mrb[22].mxu0 }
 0x4c3   :  { %v2479_v46 = vpop.f32.mrb[23].mxu0 }
 0x4c8   :  { %v823_v47 = vpop.f32.mrb[24].mxu0 }
 0x4c9   :  { %v2490_v48 = vpop.f32.mrb[25].mxu0  ;;  %v829_v49 = vsel %vm260_vm2, %v823_v47, -inf }
 0x4ca   :  { %830 = vmax.xlane.f32.xlu1 %v829_v49  ;;  %v826_v50 = vpop.f32.mrb[26].mxu0 }
 0x4cb   :  { %v2491_v51 = vpop.f32.mrb[27].mxu0 }
 0x54f   :  { %v724_v58 = vpop.xlane.xlu0 %723 }
 0x550   :  { %v725_v59 = vsub.f32 %v716_v42, %v724_v58 }
 0x552   :  { %v726_v60 = vmul.f32 1.442695, %v725_v59 }
 0x554   :  { %2681 = vpow2.f32 %v726_v60 }
 0x557   :  { %v831_v61 = vpop.xlane.xlu1 %830 }
 0x558   :  { %v832_v62 = vsub.f32 %v823_v47, %v831_v61 }
 0x55a   :  { %v833_v63 = vmul.f32 1.442695, %v832_v62 }
 0x55c   :  { %2683 = vpow2.f32 %v833_v63 }
 0x55e   :  { %v2682_v0 = vpop.eup %2681 }
 0x55f   :  { %v728_v2 = vsel %vm260_vm2, %v2682_v0, 0.0 }
 0x560   :  { %729 = vadd.xlane.f32.xlu0 %v728_v2 }
 0x566   :  { %v2684_v3 = vpop.eup %2683 }
 0x567   :  { %v835_v4 = vsel %vm260_vm2, %v2684_v3, 0.0 }
 0x568   :  { %836 = vadd.xlane.f32.xlu1 %v835_v4  ;;  %v2660_v4 = vld [vmem:[%s3254_s5 + $0x28] sm:$0xff]  }
 0x5ed   :  { %v730_v8 = vpop.xlane.xlu0 %729 }
 0x5ee   :  { %2685 = vrcp.f32 %v730_v8 }
 0x5f5   :  { %v837_v10 = vpop.xlane.xlu1 %836 }
 0x5f6   :  { %2687 = vrcp.f32 %v837_v10 }
 0x5f8   :  { %v2686_v11 = vpop.eup %2685 }
 0x5f9   :  { %v732_v12 = vmul.f32 %v2686_v11, %v2682_v0 }
 0x5fb   :  { %v733_v14 = vpack.c.bf16 %v732_v12, %v732_v12 }
 0x5fd   :  { %2483 = vmatmul.mubr.msk.bf16.vlgmr.msra.gmra.mrb[20].mxu1 %vm260_vm2, %v733_v14 }
 0x5fe   :  { %2493 = vmatpush3.bf16.msra.mxu1 %v845_v16  ;;  %2494 = vmatprep.mubr.msk.bf16.mxu1 %vm2740_vm0, %v2739_v1 }
 0x5ff   :  { %2504 = vmatprep.subr.bf16.mxu1 %v2739_v1 }
 0x600   :  { %v2688_v17 = vpop.eup %2687 }
 0x601   :  { %v839_v21 = vmul.f32 %v2688_v17, %v2684_v3  ;;  %v2659_v3 = vld [vmem:[%s3254_s5 + $0x20] sm:$0xff]  }
 0x603   :  { %v840_v22 = vpack.c.bf16 %v839_v21, %v839_v21 }
 0x605   :  { %2495 = vmatmul.mubr.msk.bf16.vlgmr.msra.gmra.mrb[24].mxu1 %vm260_vm2, %v840_v22 }
 0x606   :  { %2505 = vmatpush3.bf16.msra.mxu1 %v941_v23  ;;  %2506 = vmatprep.mubr.msk.bf16.mxu1 %vm2740_vm0, %v2739_v1 }
 0x607   :  { %2518 = vmatprep.subr.bf16.mxu1 %v2739_v1 }
 0x60d   :  { %2507 = vmatmul.mubr.msk.bf16.vlgmr.msra.gmra.mrb[28].mxu1 %vm260_vm2, %v473_v20 }
 0x60e   :  { %2522 = vmatprep.mubr.msk.bf16.mxu1 %vm2740_vm0, %v2739_v1  ;;  %2519 = vmatpush3.bf16.msra.mxu1 %v2655_v24 }
 0x60f   :  { %2520 = vmatprep.subr.bf16.mxu1 %v2739_v1 }
 0x612   :  { %2521 = vmatpush3.bf16.msra.mxu1 %v2656_v15 }
 0x613   :  { %2534 = vmatprep.subr.bf16.mxu1 %v2739_v1 }
 0x615   :  { %2523 = vmatmul.mubr.msk.bf16.vlgmr.msra.gmra.mrb[32].mxu1 %vm84_vm1, %v2859_v7 }
 0x616   :  { %2536 = vmatprep.mubr.msk.bf16.mxu1 %vm2740_vm0, %v2739_v1 }
 0x6d0   :  { %v774_v20 = vpop.f32.mrb[20].mxu1 }
 0x6d1   :  { %v2484_v26 = vpop.f32.mrb[21].mxu1 }
 0x6d2   :  { %v777_v27 = vpop.f32.mrb[22].mxu1 }
 0x6d3   :  { %v2485_v28 = vpop.f32.mrb[23].mxu1 }
 0x6d4   :  { %v2260_v28 = vld [vmem:[%s3255_s6 + $0x2] ss:$0 sm:$0xff] }
 0x6d8   :  { %v881_v29 = vpop.f32.mrb[24].mxu1 }
 0x6d9   :  { %v887_v31 = vpack.c.bf16 %v881_v29, %v774_v20  ;;  %v2496_v32 = vpop.f32.mrb[25].mxu1 }
 0x6da   :  { %v884_v33 = vpop.f32.mrb[26].mxu1 }
 0x6db   :  { %v2497_v34 = vpop.f32.mrb[27].mxu1  ;;  %2501 = vmatmul.mubr.msk.bf16.vlgmr.msra.gmra.mrb[28].mxu0 %vm260_vm2, %v887_v31 }
 0x6dc   :  { %2511 = vmatpush3.bf16.msra.mxu0 %v2657_v30  ;;  %2514 = vmatprep.mubr.msk.bf16.mxu0 %vm2740_vm0, %v2739_v1 }
 0x6dd   :  { %2512 = vmatprep.subr.bf16.mxu0 %v2739_v1 }
 0x6e0   :  { %v977_v36 = vpop.f32.mrb[28].mxu1  ;;  %2513 = vmatpush3.bf16.msra.mxu0 %v2658_v35 }
 0x6e1   :  { %v2508_v37 = vpop.f32.mrb[29].mxu1  ;;  %2526 = vmatprep.subr.bf16.mxu0 %v2739_v1 }
 0x6e2   :  { %v980_v38 = vpop.f32.mrb[30].mxu1 }
 0x6e3   :  { %v2509_v39 = vpop.f32.mrb[31].mxu1  ;;  %2515 = vmatmul.mubr.msk.bf16.vlgmr.msra.gmra.mrb[32].mxu0 %vm84_vm1, %v2859_v7 }
 0x6e4   :  { %2530 = vmatprep.mubr.msk.bf16.mxu0 %vm2740_vm0, %v2739_v1  ;;  %2527 = vmatpush3.bf16.msra.mxu0 %v2659_v3 }
 0x6e5   :  { %2528 = vmatprep.subr.bf16.mxu0 %v2739_v1 }
 0x6e8   :  { %v1109_v41 = vpop.f32.mrb[32].mxu1  ;;  %2529 = vmatpush3.bf16.msra.mxu0 %v2660_v4 }
 0x6e9   :  { %v1110_v42 = vadd.f32 %v2251_v40, %v1109_v41  ;;  %v2524_v43 = vpop.f32.mrb[33].mxu1  ;;  %2540 = vmatprep.subr.bf16.mxu0 %v2739_v1 }
 0x6ea   :  { %v1112_v44 = vpop.f32.mrb[34].mxu1 }
 0x6eb   :  { %v1183_v45 = vpack.c.bf16 %v1110_v42, %v1110_v42  ;;  %v1113_v46 = vadd.f32 %v2251_v40, %v1112_v44  ;;  %v2525_v47 = vpop.f32.mrb[35].mxu1  ;;  %2531 = vmatmul.mubr.msk.bf16.vlgmr.msra.gmra.mrb[36].mxu0 %vm84_vm1, %v2859_v7 }
 0x6ec   :  { %2542 = vmatprep.mubr.msk.bf16.mxu0 %vm2740_vm0, %v2739_v1  ;;  %v2663_v47 = vld [vmem:[%s3271_s0 + $0x30] sm:$0xff]  }
 0x6ed   :  { %v1189_v48 = vsel %vm260_vm2, %v1183_v45, 0  ;;  %v1290_v57 = vpack.c.bf16 %v1113_v46, %v1113_v46  ;;  %v2268_v45 = vld [vmem:[%s3256_s7 + $0x8] sm:$0xf] }
 0x6ee   :  { %2535 = vmatpush3.bf16.xpose.msra.mxu1 %v1189_v48  ;;  %v1403_v46 = vsel %vm322_vm3, %v2268_v45, 0  ;;  %v2664_v48 = vld [vmem:[%s3271_s0 + $0x38] sm:$0xff]  }
 0x6ef   :  { %2546 = vmatprep.subr.bf16.mxu1 %v2739_v1  ;;  %v1296_v63 = vsel %vm260_vm2, %v1290_v57, 0 }
 0x7ae   :  { %v930_v49 = vpop.f32.mrb[28].mxu0 }
 0x7af   :  { %v3040_v50 = vadd.f32 %v977_v36, %v930_v49  ;;  %v2502_v51 = vpop.f32.mrb[29].mxu0 }
 0x7b0   :  { %v933_v52 = vpop.f32.mrb[30].mxu0 }
 0x7b1   :  { %v3042_v53 = vadd.f32 %v980_v38, %v933_v52  ;;  %v2503_v54 = vpop.f32.mrb[31].mxu0 }
 0x7b6   :  { %v1043_v56 = vpop.f32.mrb[32].mxu0 }
 0x7b7   :  { %v1044_v58 = vadd.f32 %v2242_v55, %v1043_v56  ;;  %v2516_v59 = vpop.f32.mrb[33].mxu0  ;;  %v2661_v56 = vld [vmem:[%s3252_s3 + $0x30] sm:$0xff]  }
 0x7b8   :  { %v1046_v60 = vpop.f32.mrb[34].mxu0 }
 0x7b9   :  { %v1182_v61 = vpack.c.bf16 %v1044_v58, %v1044_v58  ;;  %v2517_v62 = vpop.f32.mrb[35].mxu0  ;;  %v1047_v0 = vadd.f32 %v2242_v55, %v1046_v60 }
 0x7bb   :  { %2537 = vmatmul.mubr.msk.bf16.vlgmr.msra.gmra.mrb[36].mxu1 %vm260_vm2, %v1182_v61  ;;  %v1289_v2 = vpack.c.bf16 %v1047_v0, %v1047_v0  ;;  %v2662_v61 = vld [vmem:[%s3252_s3 + $0x38] sm:$0xff]  }
 0x7bc   :  { %2547 = vmatpush3.bf16.xpose.msra.mxu1 %v1296_v63  ;;  %2548 = vmatprep.mubr.msk.bf16.mxu1 %vm2740_vm0, %v2739_v1 }
 0x7bd   :  { %2558 = vmatprep.subr.bf16.mxu1 %v2739_v1 }
 0x7be   :  { %v1175_v26 = vpop.f32.mrb[36].mxu0 }
 0x7bf   :  { %v2532_v27 = vpop.f32.mrb[37].mxu0  ;;  %v1176_v30 = vadd.f32 %v2260_v28, %v1175_v26 }
 0x7c0   :  { %v1178_v29 = vpop.f32.mrb[38].mxu0 }
 0x7c1   :  { %v2533_v31 = vpop.f32.mrb[39].mxu0  ;;  %v1179_v32 = vadd.f32 %v2260_v28, %v1178_v29  ;;  %v1184_v33 = vpack.c.bf16 %v1176_v30, %v1176_v30 }
 0x7c3   :  { %2549 = vmatmul.mubr.msk.bf16.vlgmr.msra.gmra.mrb[40].mxu1 %vm260_vm2, %v1289_v2  ;;  %v1247_v34 = vsel %vm322_vm3, %v1184_v33, 0  ;;  %v1291_v39 = vpack.c.bf16 %v1179_v32, %v1179_v32 }
 0x7c4   :  { %2560 = vmatprep.mubr.msk.bf16.mxu1 %vm2740_vm0, %v2739_v1  ;;  %2541 = vmatpush3.bf16.msra.mxu0 %v1247_v34 }
 0x7c5   :  { %2552 = vmatprep.subr.bf16.mxu0 %v2739_v1  ;;  %v1354_v41 = vsel %vm322_vm3, %v1291_v39, 0  ;;  %2559 = vmatpush3.bf16.msra.mxu1 %v1403_v46 }
 0x7c6   :  { %2572 = vmatprep.subr.bf16.mxu1 %v2739_v1 }
 0x88e   :  { %v1225_v5 = vpop.f32.mrb[36].mxu1 }
 0x88f   :  { %v2538_v6 = vpop.f32.mrb[37].mxu1  ;;  %v1231_v8 = vsel %vm260_vm2, %v1225_v5, -inf }
 0x890   :  { %1232 = vmax.xlane.f32.xlu0 %v1231_v8  ;;  %v1228_v9 = vpop.f32.mrb[38].mxu1 }
 0x891   :  { %v2539_v10 = vpop.f32.mrb[39].mxu1 }
 0x892   :  { %v2284_v10 = vld [vmem:[%s3253_s4 + $0x3] ss:$0 sm:$0xff] }
 0x896   :  { %v1332_v11 = vpop.f32.mrb[40].mxu1 }
 0x897   :  { %v2550_v12 = vpop.f32.mrb[41].mxu1  ;;  %v1338_v13 = vsel %vm260_vm2, %v1332_v11, -inf }
 0x898   :  { %1339 = vmax.xlane.f32.xlu1 %v1338_v13  ;;  %v1335_v14 = vpop.f32.mrb[42].mxu1 }
 0x899   :  { %v2551_v16 = vpop.f32.mrb[43].mxu1 }
 0x89a   :  { %v2275_v16 = vld [vmem:[%s3251_s2 + $0x3] ss:$0 sm:$0xff] }
 0x91d   :  { %v1233_v17 = vpop.xlane.xlu0 %1232 }
 0x91e   :  { %v1234_v18 = vsub.f32 %v1225_v5, %v1233_v17 }
 0x920   :  { %v1235_v21 = vmul.f32 1.442695, %v1234_v18 }
 0x922   :  { %2689 = vpow2.f32 %v1235_v21 }
 0x925   :  { %v1340_v22 = vpop.xlane.xlu1 %1339 }
 0x926   :  { %v1341_v23 = vsub.f32 %v1332_v11, %v1340_v22 }
 0x928   :  { %v1342_v24 = vmul.f32 1.442695, %v1341_v23 }
 0x92a   :  { %2691 = vpow2.f32 %v1342_v24 }
 0x92c   :  { %v2690_v25 = vpop.eup %2689 }
 0x92d   :  { %v1237_v15 = vsel %vm260_vm2, %v2690_v25, 0.0 }
 0x92e   :  { %1238 = vadd.xlane.f32.xlu0 %v1237_v15 }
 0x934   :  { %v2692_v19 = vpop.eup %2691 }
 0x935   :  { %v1344_v20 = vsel %vm260_vm2, %v2692_v19, 0.0 }
 0x936   :  { %1345 = vadd.xlane.f32.xlu1 %v1344_v20  ;;  %v2666_v20 = vld [vmem:[%s3254_s5 + $0x38] sm:$0xff]  }
 0x9bb   :  { %v1239_v35 = vpop.xlane.xlu0 %1238 }
 0x9bc   :  { %2693 = vrcp.f32 %v1239_v35 }
 0x9c3   :  { %v1346_v36 = vpop.xlane.xlu1 %1345 }
 0x9c4   :  { %2695 = vrcp.f32 %v1346_v36 }
 0x9c6   :  { %v2694_v37 = vpop.eup %2693 }
 0x9c7   :  { %v1241_v38 = vmul.f32 %v2694_v37, %v2690_v25 }
 0x9c9   :  { %v1242_v40 = vpack.c.bf16 %v1241_v38, %v1241_v38 }
 0x9cb   :  { %2543 = vmatmul.mubr.msk.bf16.vlgmr.msra.gmra.mrb[40].mxu0 %vm260_vm2, %v1242_v40 }
 0x9cc   :  { %2553 = vmatpush3.bf16.msra.mxu0 %v1354_v41  ;;  %2554 = vmatprep.mubr.msk.bf16.mxu0 %vm2740_vm0, %v2739_v1 }
 0x9cd   :  { %2564 = vmatprep.subr.bf16.mxu0 %v2739_v1 }
 0x9ce   :  { %v2696_v42 = vpop.eup %2695 }
 0x9cf   :  { %v1348_v43 = vmul.f32 %v2696_v42, %v2692_v19  ;;  %v2665_v19 = vld [vmem:[%s3254_s5 + $0x30] sm:$0xff]  }
 0x9d1   :  { %v1349_v44 = vpack.c.bf16 %v1348_v43, %v1348_v43 }
 0x9d3   :  { %2555 = vmatmul.mubr.msk.bf16.vlgmr.msra.gmra.mrb[44].mxu0 %vm260_vm2, %v1349_v44 }
 0x9d4   :  { %2568 = vmatprep.mubr.msk.bf16.mxu0 %vm2740_vm0, %v2739_v1  ;;  %2565 = vmatpush3.bf16.msra.mxu0 %v2663_v47  ;;  %v2293_v47 = vld [vmem:[%s3255_s6 + $0x3] ss:$0 sm:$0xff] }
 0x9d5   :  { %2566 = vmatprep.subr.bf16.mxu0 %v2739_v1 }
 0x9d8   :  { %2567 = vmatpush3.bf16.msra.mxu0 %v2664_v48 }
 0x9d9   :  { %2580 = vmatprep.subr.bf16.mxu0 %v2739_v1 }
 0x9db   :  { %2569 = vmatmul.mubr.msk.bf16.vlgmr.msra.gmra.mrb[48].mxu0 %vm84_vm1, %v2859_v7 }
 0x9dc   :  { %2584 = vmatprep.mubr.msk.bf16.mxu0 %vm2740_vm0, %v2739_v1  ;;  %2581 = vmatpush3.bf16.msra.mxu0 %v2665_v19  ;;  %v2713_v19 = vld [vmem:[%s3272_s19] sm:$0xff] }
 0x9dd   :  { %2582 = vmatprep.subr.bf16.mxu0 %v2739_v1 }
 0x9e0   :  { %2583 = vmatpush3.bf16.msra.mxu0 %v2666_v20 }
 0x9e1   :  { %2594 = vmatprep.subr.bf16.mxu0 %v2739_v1 }
 0x9e3   :  { %2585 = vmatmul.mubr.msk.bf16.vlgmr.msra.gmra.mrb[52].mxu0 %vm84_vm1, %v2859_v7 }
 0x9e4   :  { %2596 = vmatprep.mubr.msk.bf16.mxu0 %vm2740_vm0, %v2739_v1 }
 0xa9e   :  { %v1283_v49 = vpop.f32.mrb[40].mxu0 }
 0xa9f   :  { %v2544_v51 = vpop.f32.mrb[41].mxu0 }
 0xaa0   :  { %v1286_v52 = vpop.f32.mrb[42].mxu0 }
 0xaa1   :  { %v2545_v54 = vpop.f32.mrb[43].mxu0 }
 0xaa6   :  { %v1390_v55 = vpop.f32.mrb[44].mxu0 }
 0xaa7   :  { %v1396_v57 = vpack.c.bf16 %v1390_v55, %v1283_v49  ;;  %v2556_v58 = vpop.f32.mrb[45].mxu0 }
 0xaa8   :  { %v1393_v59 = vpop.f32.mrb[46].mxu0 }
 0xaa9   :  { %v2557_v60 = vpop.f32.mrb[47].mxu0  ;;  %2561 = vmatmul.mubr.msk.bf16.vlgmr.msra.gmra.mrb[44].mxu1 %vm260_vm2, %v1396_v57 }
 0xaaa   :  { %2573 = vmatpush3.bf16.msra.mxu1 %v2661_v56  ;;  %2576 = vmatprep.mubr.msk.bf16.mxu1 %vm2740_vm0, %v2739_v1 }
 0xaab   :  { %2574 = vmatprep.subr.bf16.mxu1 %v2739_v1 }
 0xaae   :  { %2575 = vmatpush3.bf16.msra.mxu1 %v2662_v61  ;;  %v1507_v62 = vpop.f32.mrb[48].mxu0 }
 0xaaf   :  { %2588 = vmatprep.subr.bf16.mxu1 %v2739_v1  ;;  %v2570_v63 = vpop.f32.mrb[49].mxu0 }
 0xab0   :  { %v1510_v0 = vpop.f32.mrb[50].mxu0 }
 0xab1   :  { %2577 = vmatmul.mubr.msk.bf16.vlgmr.msra.gmra.mrb[48].mxu1 %vm84_vm1, %v2859_v7  ;;  %v2571_v2 = vpop.f32.mrb[51].mxu0  ;;  %v1511_v25 = vadd.f32 %v2275_v16, %v1510_v0 }
 0xab2   :  { %2590 = vmatprep.mubr.msk.bf16.mxu1 %vm2740_vm0, %v2739_v1 }
 0xab3   :  { %v1753_v15 = vpack.c.bf16 %v1511_v25, %v1511_v25 }
 0xab6   :  { %v1639_v45 = vpop.f32.mrb[52].mxu0 }
 0xab7   :  { %v2586_v46 = vpop.f32.mrb[53].mxu0  ;;  %v1640_v49 = vadd.f32 %v2293_v47, %v1639_v45 }
 0xab8   :  { %v1642_v48 = vpop.f32.mrb[54].mxu0 }
 0xab9   :  { %v2587_v51 = vpop.f32.mrb[55].mxu0  ;;  %v1643_v52 = vadd.f32 %v2293_v47, %v1642_v48  ;;  %v1648_v54 = vpack.c.bf16 %v1640_v49, %v1640_v49  ;;  %v2304_v48 = vld [vmem:[%s3258_s9] ss:$0 sm:$0xff] }
 0xabb   :  { %v1711_v55 = vsel %vm322_vm3, %v1648_v54, 0  ;;  %v1755_v60 = vpack.c.bf16 %v1643_v52, %v1643_v52 }
 0xabc   :  { %2595 = vmatpush3.bf16.msra.mxu0 %v1711_v55  ;;  %v2305_v55 = vld [vmem:[%s3259_s10] ss:$0 sm:$0xff] }
 0xabd   :  { %2606 = vmatprep.subr.bf16.mxu0 %v2739_v1 }
 0xb7c   :  { %v1439_v3 = vpop.f32.mrb[44].mxu1 }
 0xb7d   :  { %v3117_v4 = vadd.f32 %v1439_v3, %v3040_v50  ;;  %v2562_v5 = vpop.f32.mrb[45].mxu1  ;;  %v2301_v3 = vld [vmem:[%s3256_s7 + $0xc] sm:$0xf] }
 0xb7e   :  { %v1442_v6 = vpop.f32.mrb[46].mxu1  ;;  %v1867_v5 = vsel %vm322_vm3, %v2301_v3, 0 }
 0xb7f   :  { %v3120_v8 = vadd.f32 %v1442_v6, %v3042_v53  ;;  %v2563_v9 = vpop.f32.mrb[47].mxu1  ;;  %v1508_v53 = vadd.f32 %v2275_v16, %v1507_v62  ;;  %v1818_v62 = vsel %vm322_vm3, %v1755_v60, 0  ;;  %v2671_v60 = vld [vmem:[%s3262_s13 + $0x10] sm:$0xff]  }
 0xb81   :  { %v1646_v23 = vpack.c.bf16 %v1508_v53, %v1508_v53 }
 0xb84   :  { %v1573_v11 = vpop.f32.mrb[48].mxu1 }
 0xb85   :  { %v1574_v12 = vadd.f32 %v2284_v10, %v1573_v11  ;;  %v2578_v13 = vpop.f32.mrb[49].mxu1 }
 0xb86   :  { %v1576_v14 = vpop.f32.mrb[50].mxu1 }
 0xb87   :  { %v1647_v50 = vpack.c.bf16 %v1574_v12, %v1574_v12  ;;  %v2579_v17 = vpop.f32.mrb[51].mxu1  ;;  %v1577_v21 = vadd.f32 %v2284_v10, %v1576_v14 }
 0xb89   :  { %v1653_v18 = vsel %vm260_vm2, %v1647_v50, 0  ;;  %v1754_v22 = vpack.c.bf16 %v1577_v21, %v1577_v21 }
 0xb8a   :  { %2589 = vmatpush3.bf16.xpose.msra.mxu1 %v1653_v18  ;;  %v2303_v18 = vld [vmem:[%s3257_s8] ss:$0 sm:$0xff] }
 0xb8b   :  { %2600 = vmatprep.subr.bf16.mxu1 %v2739_v1  ;;  %v1760_v24 = vsel %vm260_vm2, %v1754_v22, 0 }
 0xb91   :  { %2591 = vmatmul.mubr.msk.bf16.vlgmr.msra.gmra.mrb[52].mxu1 %vm260_vm2, %v1646_v23 }
 0xb92   :  { %2601 = vmatpush3.bf16.xpose.msra.mxu1 %v1760_v24  ;;  %2602 = vmatprep.mubr.msk.bf16.mxu1 %vm2740_vm0, %v2739_v1 }
 0xb93   :  { %2612 = vmatprep.subr.bf16.mxu1 %v2739_v1 }
 0xb99   :  { %2603 = vmatmul.mubr.msk.bf16.vlgmr.msra.gmra.mrb[56].mxu1 %vm260_vm2, %v1753_v15 }
 0xb9a   :  { %2614 = vmatprep.mubr.msk.bf16.mxu1 %vm2740_vm0, %v2739_v1  ;;  %2613 = vmatpush3.bf16.msra.mxu1 %v1867_v5 }
 0xb9b   :  { %2626 = vmatprep.subr.bf16.mxu1 %v2739_v1 }
 0xc64   :  { %v1689_v26 = vpop.f32.mrb[52].mxu1 }
 0xc65   :  { %v2592_v27 = vpop.f32.mrb[53].mxu1  ;;  %v1695_v28 = vsel %vm260_vm2, %v1689_v26, -inf }
 0xc66   :  { %1696 = vmax.xlane.f32.xlu0 %v1695_v28  ;;  %v1692_v29 = vpop.f32.mrb[54].mxu1  ;;  %v2714_v27 = vld [vmem:[%s3272_s19 + $0x8] sm:$0xff] }
 0xc67   :  { %v2593_v30 = vpop.f32.mrb[55].mxu1 }
 0xc6c   :  { %v1796_v31 = vpop.f32.mrb[56].mxu1 }
 0xc6d   :  { %v2604_v32 = vpop.f32.mrb[57].mxu1  ;;  %v1802_v33 = vsel %vm260_vm2, %v1796_v31, -inf }
 0xc6e   :  { %1803 = vmax.xlane.f32.xlu1 %v1802_v33  ;;  %v1799_v34 = vpop.f32.mrb[58].mxu1 }
 0xc6f   :  { %v2605_v35 = vpop.f32.mrb[59].mxu1 }
 0xcf3   :  { %v1697_v36 = vpop.xlane.xlu0 %1696 }
 0xcf4   :  { %v1698_v37 = vsub.f32 %v1689_v26, %v1697_v36 }
 0xcf6   :  { %v1699_v7 = vmul.f32 1.442695, %v1698_v37 }
 0xcf8   :  { %2697 = vpow2.f32 %v1699_v7  ;;  %v2667_v7 = vld [vmem:[%s3260_s11] sm:$0xff]  }
 0xcfb   :  { %v1804_v38 = vpop.xlane.xlu1 %1803 }
 0xcfc   :  { %v1805_v39 = vsub.f32 %v1796_v31, %v1804_v38  ;;  %v2668_v38 = vld [vmem:[%s3260_s11 + $0x8] sm:$0xff]  }
 0xcfe   :  { %v1806_v40 = vmul.f32 1.442695, %v1805_v39  ;;  %v2669_v39 = vld [vmem:[%s3262_s13] sm:$0xff]  }
 0xd00   :  { %2699 = vpow2.f32 %v1806_v40  ;;  %v2670_v40 = vld [vmem:[%s3262_s13 + $0x8] sm:$0xff]  }
 0xd02   :  { %v2698_v41 = vpop.eup %2697 }
 0xd03   :  { %v1701_v42 = vsel %vm260_vm2, %v2698_v41, 0.0 }
 0xd04   :  { %1702 = vadd.xlane.f32.xlu0 %v1701_v42 }
 0xd0a   :  { %v2700_v43 = vpop.eup %2699 }
 0xd0b   :  { %v1808_v44 = vsel %vm260_vm2, %v2700_v43, 0.0 }
 0xd0c   :  { %1809 = vadd.xlane.f32.xlu1 %v1808_v44 }
 0xd91   :  { %v1703_v56 = vpop.xlane.xlu0 %1702 }
 0xd92   :  { %2701 = vrcp.f32 %v1703_v56 }
 0xd99   :  { %v1810_v57 = vpop.xlane.xlu1 %1809 }
 0xd9a   :  { %2703 = vrcp.f32 %v1810_v57 }
 0xd9c   :  { %v2702_v58 = vpop.eup %2701 }
 0xd9d   :  { %v1705_v59 = vmul.f32 %v2702_v58, %v2698_v41 }
 0xd9f   :  { %v1706_v61 = vpack.c.bf16 %v1705_v59, %v1705_v59 }
 0xda1   :  { %2597 = vmatmul.mubr.msk.bf16.vlgmr.msra.gmra.mrb[56].mxu0 %vm260_vm2, %v1706_v61  ;;  %v2672_v61 = vld [vmem:[%s3262_s13 + $0x18] sm:$0xff]  }
 0xda2   :  { %2607 = vmatpush3.bf16.msra.mxu0 %v1818_v62  ;;  %2608 = vmatprep.mubr.msk.bf16.mxu0 %vm2740_vm0, %v2739_v1  ;;  %v2306_v62 = vld [vmem:[%s3261_s12] ss:$0 sm:$0xff] }
 0xda3   :  { %2618 = vmatprep.subr.bf16.mxu0 %v2739_v1 }
 0xda4   :  { %v2704_v63 = vpop.eup %2703 }
 0xda5   :  { %v1812_v0 = vmul.f32 %v2704_v63, %v2700_v43 }
 0xda7   :  { %v1813_v2 = vpack.c.bf16 %v1812_v0, %v1812_v0 }
 0xda9   :  { %2609 = vmatmul.mubr.msk.bf16.vlgmr.msra.gmra.mrb[60].mxu0 %vm260_vm2, %v1813_v2 }
 0xdaa   :  { %2622 = vmatprep.mubr.msk.bf16.mxu0 %vm2740_vm0, %v2739_v1  ;;  %2619 = vmatpush3.bf16.msra.mxu0 %v2667_v7  ;;  %v2317_v7 = vld [vmem:[%s3265_s16] ss:$0 sm:$0xff] }
 0xdab   :  { %2620 = vmatprep.subr.bf16.mxu0 %v2739_v1 }
 0xdae   :  { %2621 = vmatpush3.bf16.msra.mxu0 %v2668_v38 }
 0xe74   :  { %v1747_v6 = vpop.f32.mrb[56].mxu0 }
 0xe75   :  { %v2598_v9 = vpop.f32.mrb[57].mxu0 }
 0xe76   :  { %v1750_v10 = vpop.f32.mrb[58].mxu0 }
 0xe77   :  { %v2599_v11 = vpop.f32.mrb[59].mxu0 }
 0xe7c   :  { %v1854_v12 = vpop.f32.mrb[60].mxu0 }
 0xe7d   :  { %v1860_v13 = vpack.c.bf16 %v1854_v12, %v1747_v6  ;;  %v2610_v14 = vpop.f32.mrb[61].mxu0 }
 0xe7e   :  { %v1857_v16 = vpop.f32.mrb[62].mxu0 }
 0xe7f   :  { %v2611_v50 = vpop.f32.mrb[63].mxu0  ;;  %2615 = vmatmul.mubr.msk.bf16.vlgmr.msra.gmra.mrb[60].mxu1 %vm260_vm2, %v1860_v13 }
 0xe80   :  { %2634 = vmatprep.mubr.msk.bf16.mxu1 %vm2740_vm0, %v2739_v1  ;;  %2627 = vmatpush3.bf16.msra.mxu1 %v2669_v39 }
 0xe81   :  { %2628 = vmatprep.subr.bf16.mxu1 %v2739_v1 }
 0xe84   :  { %2629 = vmatpush3.bf16.msra.mxu1 %v2670_v40 }
 0xe85   :  { %2630 = vmatprep.subr.bf16.mxu1 %v2739_v1 }
 0xe88   :  { %2631 = vmatpush3.bf16.msra.mxu1 %v2671_v60 }
 0xe89   :  { %2632 = vmatprep.subr.bf16.mxu1 %v2739_v1  ;;  %v2310_v1 = vld [vmem:[%s3263_s14] ss:$0 sm:$0xff] }
 0xe8c   :  { %2633 = vmatpush3.bf16.msra.mxu1 %v2672_v61 }
 0xf52   :  { %v1903_v17 = vpop.f32.mrb[60].mxu1 }
 0xf53   :  { %v1910_v21 = vadd.f32 %v1903_v17, %v3117_v4  ;;  %v2616_v53 = vpop.f32.mrb[61].mxu1 }
 0xf54   :  { %v1906_v22 = vpop.f32.mrb[62].mxu1 }
 0xf55   :  { %v1919_v23 = vadd.f32 %v2303_v18, %v1910_v21  ;;  %v1911_v24 = vadd.f32 %v1906_v22, %v3120_v8  ;;  %v2617_v25 = vpop.f32.mrb[63].mxu1 }
 0xf57   :  { %v1920_v15 = vadd.f32 %v2303_v18, %v1911_v24  ;;  %v1921_v20 = vadd.f32 %v2713_v19, %v1919_v23 }
 0xf59   :  { %v1923_v26 = vsel %vm84_vm1, %v1921_v20, 0.0  ;;  %v1922_v28 = vadd.f32 %v2714_v27, %v1920_v15 }
 0xf5a   :  { %1924 = vadd.xlane.f32.xlu0 %v1923_v26 }
 0xf5b   :  { %v1926_v4 = vsel %vm84_vm1, %v1922_v28, 0.0 }
 0xf5c   :  { %1927 = vadd.xlane.f32.xlu1 %v1926_v4 }
 0xfe7   :  { %v1925_v29 = vpop.xlane.xlu0 %1924 }
 0xfe8   :  { %v1930_v8 = vmul.f32 0.03125, %v1925_v29 }
 0xfe9   :  { %v1928_v30 = vpop.xlane.xlu1 %1927 }
 0xfea   :  { %v1932_v31 = vsub.f32 %v1921_v20, %v1930_v8  ;;  %v1931_v32 = vmul.f32 0.03125, %v1928_v30 }
 0xfec   :  { %v1933_v33 = vsub.f32 %v1922_v28, %v1931_v32  ;;  %v1934_v34 = vmul.f32 %v1932_v31, %v1932_v31 }
 0xfee   :  { %v1936_v35 = vsel %vm84_vm1, %v1934_v34, 0.0  ;;  %v1935_v36 = vmul.f32 %v1933_v33, %v1933_v33 }
 0xfef   :  { %1937 = vadd.xlane.f32.xlu0 %v1936_v35  ;;  %v2316_v35 = vld [vmem:[%s3264_s15] ss:$0 sm:$0xff] }
 0xff0   :  { %v1939_v37 = vsel %vm84_vm1, %v1935_v36, 0.0 }
 0xff1   :  { %1940 = vadd.xlane.f32.xlu1 %v1939_v37 }
0x107c   :  { %v1938_v41 = vpop.xlane.xlu0 %1937 }
0x107d   :  { %v1942_v42 = vmul.f32 0.03125, %v1938_v41 }
0x107e   :  { %v1941_v43 = vpop.xlane.xlu1 %1940 }
0x107f   :  { %v1944_v44 = vadd.f32 0.1, %v1942_v42  ;;  %v1943_v45 = vmul.f32 0.03125, %v1941_v43 }
0x1081   :  { %2705 = vrsqrt.f32 %v1944_v44  ;;  %v1945_v46 = vadd.f32 0.1, %v1943_v45 }
0x1083   :  { %2707 = vrsqrt.f32 %v1945_v46 }
0x108b   :  { %v2706_v47 = vpop.eup %2705 }
0x108c   :  { %v1948_v49 = vmul.f32 %v2706_v47, %v1932_v31 }
0x108d   :  { %v2708_v51 = vpop.eup %2707 }
0x108e   :  { %v1957_v52 = vmul.f32 %v2304_v48, %v1948_v49  ;;  %v1949_v54 = vmul.f32 %v2708_v51, %v1933_v33 }
0x1090   :  { %v1958_v56 = vmul.f32 %v2304_v48, %v1949_v54  ;;  %v1966_v57 = vadd.f32 %v2305_v55, %v1957_v52 }
0x1092   :  { %v1967_v58 = vadd.f32 %v2305_v55, %v1958_v56 }
0x1094   :  { %v1968_v59 = vpack.c.bf16 %v1967_v58, %v1966_v57 }
0x1096   :  { %2623 = vmatmul.mubr.msk.bf16.vlgmr.msra.gmra.mrb[64].mxu0 %vm84_vm1, %v1968_v59 }
0x1169   :  { %v2029_v63 = vpop.f32.mrb[64].mxu0 }
0x116a   :  { %v2030_v0 = vadd.f32 %v2306_v62, %v2029_v63  ;;  %v2624_v2 = vpop.f32.mrb[65].mxu0 }
0x116b   :  { %v2032_v3 = vpop.f32.mrb[66].mxu0 }
0x116c   :  { %v2033_v5 = vadd.f32 %v2306_v62, %v2032_v3  ;;  %v2625_v6 = vpop.f32.mrb[67].mxu0  ;;  %v2036_v9 = vmax.f32 %v2030_v0, 0.0 }
0x116e   :  { %v2037_v10 = vmax.f32 %v2033_v5, 0.0 }
0x1170   :  { %v2038_v11 = vpack.c.bf16 %v2037_v10, %v2036_v9 }
0x1172   :  { %2635 = vmatmul.mubr.msk.bf16.vlgmr.msra.gmra.mrb[64].mxu1 %vm2078_vm4, %v2038_v11 }
0x1245   :  { %v2116_v12 = vpop.f32.mrb[64].mxu1 }
0x1246   :  { %v2117_v13 = vadd.f32 %v2310_v1, %v2116_v12  ;;  %v2636_v14 = vpop.f32.mrb[65].mxu1 }
0x1247   :  { %v2119_v16 = vpop.f32.mrb[66].mxu1 }
0x1248   :  { %v2120_v50 = vadd.f32 %v2310_v1, %v2119_v16  ;;  %v2637_v17 = vpop.f32.mrb[67].mxu1  ;;  %v2123_v18 = vadd.f32 %v2117_v13, %v1966_v57 }
0x124a   :  { %v2125_v21 = vsel %vm84_vm1, %v2123_v18, 0.0  ;;  %v2124_v53 = vadd.f32 %v2120_v50, %v1967_v58 }
0x124b   :  { %2126 = vadd.xlane.f32.xlu0 %v2125_v21 }
0x124c   :  { %v2128_v22 = vsel %vm84_vm1, %v2124_v53, 0.0 }
0x124d   :  { %2129 = vadd.xlane.f32.xlu1 %v2128_v22 }
0x12d8   :  { %v2127_v23 = vpop.xlane.xlu0 %2126 }
0x12d9   :  { %v2131_v24 = vmul.f32 0.03125, %v2127_v23 }
0x12da   :  { %v2130_v25 = vpop.xlane.xlu1 %2129 }
0x12db   :  { %v2133_v15 = vsub.f32 %v2123_v18, %v2131_v24  ;;  %v2132_v19 = vmul.f32 0.03125, %v2130_v25 }
0x12dd   :  { %v2134_v20 = vsub.f32 %v2124_v53, %v2132_v19  ;;  %v2135_v26 = vmul.f32 %v2133_v15, %v2133_v15 }
0x12df   :  { %v2137_v27 = vsel %vm84_vm1, %v2135_v26, 0.0  ;;  %v2136_v28 = vmul.f32 %v2134_v20, %v2134_v20 }
0x12e0   :  { %2138 = vadd.xlane.f32.xlu0 %v2137_v27 }
0x12e1   :  { %v2140_v4 = vsel %vm84_vm1, %v2136_v28, 0.0 }
0x12e2   :  { %2141 = vadd.xlane.f32.xlu1 %v2140_v4 }
0x136d   :  { %v2139_v29 = vpop.xlane.xlu0 %2138 }
0x136e   :  { %v2143_v8 = vmul.f32 0.03125, %v2139_v29 }
0x136f   :  { %v2142_v30 = vpop.xlane.xlu1 %2141 }
0x1370   :  { %v2145_v31 = vadd.f32 0.1, %v2143_v8  ;;  %v2144_v32 = vmul.f32 0.03125, %v2142_v30 }
0x1372   :  { %2709 = vrsqrt.f32 %v2145_v31  ;;  %v2146_v33 = vadd.f32 0.1, %v2144_v32 }
0x1374   :  { %2711 = vrsqrt.f32 %v2146_v33 }
0x137c   :  { %v2710_v34 = vpop.eup %2709 }
0x137d   :  { %v2149_v36 = vmul.f32 %v2710_v34, %v2133_v15 }
0x137e   :  { %v2712_v37 = vpop.eup %2711 }
0x137f   :  { %v2150_v38 = vmul.f32 %v2712_v37, %v2134_v20  ;;  %v2158_v39 = vmul.f32 %v2316_v35, %v2149_v36 }
0x1381   :  { %v2159_v40 = vmul.f32 %v2316_v35, %v2150_v38  ;;  %v2167_v41 = vadd.f32 %v2317_v7, %v2158_v39 }
0x1383   :  { %v2168_v42 = vadd.f32 %v2317_v7, %v2159_v40  ;;  %2169 = vst.msk [vmem:[#allocation2] sm:$0xff] %vm84_vm1, %v2167_v41 }
0x1385   :  { %2170 = vst.msk [vmem:[#allocation2 + $0x8] sm:$0xff] %vm84_vm1, %v2168_v42 }
0x1386   :  { %2726 = shalt.err (!%p2723_p4)
}
0x1387   :  { %s2727_s28 = scalar_lea.hbm %s3266_s17, 256 }
0x1388   :  { %p2728_p5 = scmp.ne.s32.totalorder %s3266_s17, %s2727_s28  ;;  %p2731_p6 = scmp.lt.u32.totalorder %s2727_s28, %s3266_s17 }
0x138a   :  { %p2733_p7 = pnand %p2731_p6, %p2728_p5 }
0x138c   :  { %2736 = shalt.err (!%p2733_p7)
}
0x138d   :  { %s2742_s3 = smov 128   ;;  %s2743_s30 = smov 8  }
0x138e   :  { %2182 = dma.vmem_to_hbm [thread:$0]  %s2177_s26, 256, %s3266_s17, [#allocation3], %s2742_s3, %s2742_s3, %s2743_s30  }
0x138f   :  { %2737 = dma.done.wait [#allocation3], 256  }
0x1390   :  { %2738 = vsyncadd [#allocation3], 4294967040 }
0x1391   :  { %2186 = vsyncpa [#allocation3], 1 }

</bundles_post_ra>
